<compile_context>
chip_gen: v7x
topology: tpu7x:2x2x1
jax: 0.10.0
libtpu: 0.0.40
codegen_flags: <defaults>
</compile_context>

<pallas_src>
import functools

import jax
import jax.numpy as jnp
from jax import lax
from jax.experimental import pallas as pl
from jax.experimental.pallas import tpu as pltpu


# -----------------------------------------------------------------------------
# Kernel 1: CNN branch (3x3 conv + bias + ReLU + H-sum; W-pool folded into LSTM)
# -----------------------------------------------------------------------------
def _cnn_kernel(x_ref, w_ref, brow_ref, hsum_ref, o_ref, xp_ref,
                *, tf, hh, ww, cin, cout):
    """One tile of `tf` frames (time-major frame order).

      x_ref:    (tf, H, W*Cin)      unpadded NHWC frames
      w_ref:    (3, W*Cin, W*Cout)  bf16 banded conv weights: kj + Cin folded
                                    into K; W-boundary taps dropped == W pad
      brow_ref: (1, W*Cout)         conv bias tiled over W
      hsum_ref: (tf, tf*H)          0/1 per-frame H-summation matrix
      o_ref:    (tf, W*Cout)        H-summed ReLU'd conv maps (lane-dense)
      xp_ref:   VMEM (tf, H+2, W*Cin)  H-halo scratch (in-kernel zero pad)
    """
    wc = ww * cin
    # --- in-kernel H halo: zero the border rows, copy the tile interior. ----
    zrow = jnp.zeros((tf, 1, wc), x_ref.dtype)
    xp_ref[:, 0:1, :] = zrow
    xp_ref[:, hh + 1:hh + 2, :] = zrow
    xp_ref[:, 1:hh + 1, :] = x_ref[...]

    # --- 3 matmuls (one per ki); kj and the W zero-pad live in the weights. -
    acc = jnp.zeros((tf * hh, ww * cout), jnp.float32)
    for ki in range(3):
        xs = xp_ref[:, ki:ki + hh, :].reshape(tf * hh, wc)       # Ref slice
        acc = acc + jnp.dot(xs.astype(jnp.bfloat16), w_ref[ki],
                            preferred_element_type=jnp.float32)
    p = jnp.maximum(acc + brow_ref[...], 0.0)                    # (tf*H, W*Cout)

    # --- sum over H with a constant 0/1 matmul (MXU epilogue, lane-dense). --
    o_ref[...] = jnp.dot(hsum_ref[...], p, preferred_element_type=jnp.float32)


# -----------------------------------------------------------------------------
# Kernel 2: fused IMU Linear+ReLU + feature concat + masked single-layer LSTM
# -----------------------------------------------------------------------------
def _imu_lstm_kernel(cnn_ref, imul_ref, imug_ref, bm_ref, lens_ref,
                     wil_ref, wig_ref, bi_ref,
                     wxc_ref, wxi_ref, wxb_ref, whh_ref, bg_ref,
                     out_ref, hN_ref, cN_ref, gx_scr,
                     *, seq, bpad, hidden, group):
    """Time-major inputs, batch padded to `bpad` (multiple of 8).

    The concat [cnn | imu | body_motor] is never materialized: w_ih is split
    by rows in the wrapper and the three contributions are summed.  The CNN
    contribution uses H-summed-but-not-W-pooled features with the W average
    pool (and 1/(H*W)) folded into wxc.  All input-side gate pre-activations
    are computed with batched matmuls up front; only h @ w_hh + gate math runs
    per step.  Outputs are packed `group` steps at a time into a lane-dense
    (Bp, S*H) output (row-major == (Bp, S, H), so no wrapper transpose).
    """
    H = hidden
    sb = seq * bpad

    # ---- batched feed-forward part (all time steps at once) -----------------
    imu = jnp.maximum(
        jnp.dot(imul_ref[...].reshape(sb, -1), wil_ref[...],
                preferred_element_type=jnp.float32)
        + jnp.dot(imug_ref[...].reshape(sb, -1), wig_ref[...],
                  preferred_element_type=jnp.float32)
        + bi_ref[...], 0.0)                                      # (S*Bp, F_imu)
    gx = (jnp.dot(cnn_ref[...].reshape(sb, -1), wxc_ref[...],
                  preferred_element_type=jnp.float32)
          + jnp.dot(imu, wxi_ref[...], preferred_element_type=jnp.float32)
          + bm_ref[...].reshape(sb, 1) * wxb_ref[...]
          + bg_ref[...])                                         # (S*Bp, 4H)
    gx_scr[...] = gx.reshape(seq, bpad, 4 * H)

    lens_v = lens_ref[...]                                       # (Bp, 1) int32
    w_hh = whh_ref[...]                                          # (H, 4H)

    # ---- serial recurrence, `group` steps per loop iteration ----------------
    def body(g, carry):
        h, c = carry
        outs = []
        for t_off in range(group):
            t = g * group + t_off
            gates = gx_scr[t] + jnp.dot(h, w_hh,
                                        preferred_element_type=jnp.float32)
            # Transcendentals only on the lanes that need them (i,f,o sigmoid;
            # g tanh).  Gate order (i, f, g, o) as in torch.nn.LSTM.
            if_g = jax.nn.sigmoid(gates[:, :2 * H])
            g_g = jnp.tanh(gates[:, 2 * H:3 * H])
            o_g = jax.nn.sigmoid(gates[:, 3 * H:])
            c_new = if_g[:, H:] * c + if_g[:, :H] * g_g
            h_new = o_g * jnp.tanh(c_new)
            # pack_padded_sequence semantics: freeze state, emit zeros past
            # x_lens[b].  (x_lens[b] == 0 yields all zeros where torch's
            # pack_padded_sequence would raise.)
            valid = t < lens_v                                   # (Bp, 1) bool
            outs.append(jnp.where(valid, h_new, 0.0))
            h = jnp.where(valid, h_new, h)
            c = jnp.where(valid, c_new, c)
        start = pl.multiple_of(g * (group * H), group * H)
        out_ref[:, pl.ds(start, group * H)] = jnp.concatenate(outs, axis=1)
        return h, c

    ngroups = seq // group
    h0 = jnp.zeros((bpad, H), jnp.float32)
    c0 = jnp.zeros((bpad, H), jnp.float32)
    h_fin, c_fin = lax.fori_loop(0, ngroups, body, (h0, c0),
                                 unroll=bool(ngroups <= 8))
    hN_ref[...] = h_fin
    cN_ref[...] = c_fin


# -----------------------------------------------------------------------------
# Wrappers (tiny layout glue in plain JAX, hot path in Pallas)
# -----------------------------------------------------------------------------
def _prep_cnn_weights(w_conv, b_conv, ww):
    """Banded (W*Cin, W*Cout) conv matrices, one per ki: kj and the implicit W
    zero-padding are folded into K (boundary taps dropped), plus tiled bias."""
    cin, cout = w_conv.shape[2], w_conv.shape[3]
    win = jnp.arange(ww)[:, None]
    wout = jnp.arange(ww)[None, :]
    kj = win - wout + 1                                          # (W, W)
    valid = (kj >= 0) & (kj <= 2)
    wg = jnp.where(valid[None, :, :, None, None],
                   w_conv.astype(jnp.float32)[:, jnp.clip(kj, 0, 2)], 0.0)
    # (3, W_in, W_out, Cin, Cout) -> (3, W_in*Cin, W_out*Cout)
    wband = jnp.transpose(wg, (0, 1, 3, 2, 4)).reshape(3, ww * cin, ww * cout)
    brow = jnp.tile(b_conv.astype(jnp.float32), ww).reshape(1, ww * cout)
    return wband.astype(jnp.bfloat16), brow


def cnn_forward(frames, wband, brow, *, hh, ww, cin, cout, tf):
    """frames: (Nf, H, W*Cin) unpadded NHWC, time-major frame order."""
    nf = frames.shape[0]
    hsum = jnp.kron(jnp.eye(tf, dtype=jnp.float32),
                    jnp.ones((1, hh), jnp.float32))              # (tf, tf*H)
    return pl.pallas_call(
        functools.partial(_cnn_kernel, tf=tf, hh=hh, ww=ww, cin=cin, cout=cout),
        out_shape=jax.ShapeDtypeStruct((nf, ww * cout), jnp.float32),
        grid=(nf // tf,),
        in_specs=[
            pl.BlockSpec((tf, hh, ww * cin), lambda i: (i, 0, 0)),
            pl.BlockSpec((3, ww * cin, ww * cout), lambda i: (0, 0, 0)),
            pl.BlockSpec((1, ww * cout), lambda i: (0, 0)),
            pl.BlockSpec((tf, tf * hh), lambda i: (0, 0)),
        ],
        out_specs=pl.BlockSpec((tf, ww * cout), lambda i: (i, 0)),
        scratch_shapes=[pltpu.VMEM((tf, hh + 2, ww * cin), frames.dtype)],
        compiler_params=pltpu.CompilerParams(
            dimension_semantics=("parallel",)),   # shards frame tiles on v7x
    )(frames, wband, brow, hsum)


def imu_lstm_forward(cnn_tm, imu_lin_tm, imu_gyro_tm, bm_tm, lens_p,
                     w_imu, b_imu, wxc_eff, w_ih, w_hh, b_lstm,
                     *, cnn_feat, imu_feat, hidden, group):
    s, bp, _ = cnn_tm.shape
    n_lin = imu_lin_tm.shape[-1]
    out_flat, h_n, c_n = pl.pallas_call(
        functools.partial(_imu_lstm_kernel, seq=s, bpad=bp, hidden=hidden,
                          group=group),
        out_shape=(jax.ShapeDtypeStruct((bp, s * hidden), jnp.float32),
                   jax.ShapeDtypeStruct((bp, hidden), jnp.float32),
                   jax.ShapeDtypeStruct((bp, hidden), jnp.float32)),
        scratch_shapes=[pltpu.VMEM((s, bp, 4 * hidden), jnp.float32)],
    )(cnn_tm, imu_lin_tm, imu_gyro_tm, bm_tm, lens_p,
      w_imu[:n_lin], w_imu[n_lin:], b_imu.reshape(1, -1),
      wxc_eff,
      w_ih[cnn_feat:cnn_feat + imu_feat],
      w_ih[cnn_feat + imu_feat:].reshape(1, -1),
      w_hh, b_lstm.reshape(1, -1))
    return out_flat, h_n, c_n


def full_model_both_forward(x, x_lens, body_motor, imu_linear, imu_gyro, params):
    """Mirrors FullModel_both.forward.  x: (B, S, C, H, W) NCHW per frame."""
    b, s, c, hh, ww = x.shape
    cnn_feat = params["b_conv"].shape[0]
    imu_feat = params["b_imu"].shape[0]
    hidden = params["w_hh"].shape[0]
    bp = ((b + 7) // 8) * 8                        # pad batch to f32 sublanes

    # --- CNN branch: single fused XLA pass NCHW->NHWC + time-major.  The halo
    # pad now happens inside the kernel, so this is the only wrapper-side pass
    # over the frame tensor. ---
    frames = jnp.transpose(x, (1, 0, 3, 4, 2)).reshape(s * b, hh, ww * c)
    wband, brow = _prep_cnn_weights(params["w_conv"], params["b_conv"], ww)
    nf = s * b
    tf = nf
    for cand in (64, 32, 16, 8):                   # largest tile that divides nf
        if nf % cand == 0:
            tf = cand
            break
    qq = cnn_forward(frames, wband, brow,
                     hh=hh, ww=ww, cin=c, cout=cnn_feat, tf=tf)  # (S*B, W*Cf)

    # --- tiny glue (a few KB of features): reshape / pad for the LSTM kernel.
    pad_b = ((0, 0), (0, bp - b), (0, 0))
    cnn_tm = jnp.pad(qq.reshape(s, b, ww * cnn_feat), pad_b)
    imu_lin_tm = jnp.pad(jnp.transpose(imu_linear, (1, 0, 2)), pad_b)
    imu_gyro_tm = jnp.pad(jnp.transpose(imu_gyro, (1, 0, 2)), pad_b)
    bm_tm = jnp.pad(jnp.transpose(body_motor)[..., None], pad_b)
    lens_p = jnp.pad(x_lens.astype(jnp.int32), (0, bp - b)).reshape(bp, 1)

    # Fold the CNN W average pool (and 1/(H*W)) into the LSTM cnn input rows.
    wxc_eff = jnp.tile(params["w_ih"][:cnn_feat], (ww, 1)) / float(hh * ww)

    group = 4 if s % 4 == 0 else (2 if s % 2 == 0 else 1)
    out_flat, h_n, c_n = imu_lstm_forward(
        cnn_tm, imu_lin_tm, imu_gyro_tm, bm_tm, lens_p,
        params["w_imu"], params["b_imu"], wxc_eff,
        params["w_ih"], params["w_hh"], params["b_lstm"],
        cnn_feat=cnn_feat, imu_feat=imu_feat, hidden=hidden, group=group)

    # (Bp, S*H) row-major == (Bp, S, H): no output transpose needed.
    outputs = out_flat[:b].reshape(b, s, hidden)
    # (num_layers=1, B, H) like torch.nn.LSTM; h/c are the last *valid* states.
    return outputs, x_lens, h_n[:b][None], c_n[:b][None]


# -----------------------------------------------------------------------------
# Main
# -----------------------------------------------------------------------------
if __name__ == "__main__":
    B, S, C, HH, WW = 2, 8, 4, 16, 16
    CNN_FEAT, IMU_FEAT, HIDDEN = 8, 8, 32
    D = CNN_FEAT + IMU_FEAT + 1

    key = jax.random.PRNGKey(0)
    ks = jax.random.split(key, 12)

    x = jax.random.normal(ks[0], (B, S, C, HH, WW), jnp.float32)
    x_lens = jnp.array([S, S - 3], dtype=jnp.int32)
    body_motor = jax.random.normal(ks[1], (B, S), jnp.float32)
    imu_linear = jax.random.normal(ks[2], (B, S, 3), jnp.float32)
    imu_gyro = jax.random.normal(ks[3], (B, S, 3), jnp.float32)

    params = {
        # CNN: Conv2d(C, CNN_FEAT, 3, padding=1) + ReLU + global avg pool (HWIO).
        "w_conv": 0.1 * jax.random.normal(ks[4], (3, 3, C, CNN_FEAT), jnp.float32),
        "b_conv": 0.1 * jax.random.normal(ks[5], (CNN_FEAT,), jnp.float32),
        # IMU: Linear(6, IMU_FEAT) + ReLU over concat(linear, gyro).
        "w_imu": 0.1 * jax.random.normal(ks[6], (6, IMU_FEAT), jnp.float32),
        "b_imu": 0.1 * jax.random.normal(ks[7], (IMU_FEAT,), jnp.float32),
        # LSTM: single layer, input D, hidden HIDDEN, gate order (i, f, g, o).
        # b_lstm stands for (b_ih + b_hh) pre-summed when porting torch weights.
        "w_ih": 0.1 * jax.random.normal(ks[8], (D, 4 * HIDDEN), jnp.float32),
        "w_hh": 0.1 * jax.random.normal(ks[9], (HIDDEN, 4 * HIDDEN), jnp.float32),
        "b_lstm": 0.1 * jax.random.normal(ks[10], (4 * HIDDEN,), jnp.float32),
    }

    fwd = jax.jit(full_model_both_forward)
    outputs, output_lengths, hidden_state, cell_state = fwd(
        x, x_lens, body_motor, imu_linear, imu_gyro, params)

    jax.block_until_ready((outputs, output_lengths, hidden_state, cell_state))
    assert outputs.shape == (B, S, HIDDEN)
    assert hidden_state.shape == (1, B, HIDDEN)
    assert cell_state.shape == (1, B, HIDDEN)
    print("KERNEL_OK")
</pallas_src>

<mosaic_0001>
module attributes {stable_mosaic.version = 11 : i64} {
  func.func @_cnn_kernel(%arg0: i32, %arg1: memref<16x16x64xf32, #tpu.memory_space<vmem>>, %arg2: memref<3x64x128xbf16, #tpu.memory_space<vmem>>, %arg3: memref<1x128xf32, #tpu.memory_space<vmem>>, %arg4: memref<16x256xf32, #tpu.memory_space<vmem>>, %arg5: memref<16x128xf32, #tpu.memory_space<vmem>>, %arg6: memref<16x18x64xf32, #tpu.memory_space<vmem>>) attributes {dimension_semantics = [#tpu.dimension_semantics<parallel>], iteration_bounds = array<i64: 1>, scalar_prefetch = 0 : i64, scratch_operands = 1 : i64, tpu.core_type = #tpu.core_type<tc>, window_params = [{transform_indices = @transform_0, window_bounds = array<i64: 16, 16, 64>}, {pipeline_mode = #tpu.pipeline_mode<synchronous>, transform_indices = @transform_1, window_bounds = array<i64: 3, 64, 128>}, {pipeline_mode = #tpu.pipeline_mode<synchronous>, transform_indices = @transform_2, window_bounds = array<i64: 1, 128>}, {pipeline_mode = #tpu.pipeline_mode<synchronous>, transform_indices = @transform_3, window_bounds = array<i64: 16, 256>}, {transform_indices = @transform_4, window_bounds = array<i64: 16, 128>}]} {
    %cst = arith.constant 0.000000e+00 : f32
    %0 = vector.broadcast %cst : f32 to vector<16x1x64xf32>
    %c0 = arith.constant 0 : index
    %c0_0 = arith.constant 0 : index
    %c0_1 = arith.constant 0 : index
    %1 = vector.load %arg6[%c0, %c0_0, %c0_1] : memref<16x18x64xf32, #tpu.memory_space<vmem>>, vector<16x1x64xf32>
    tpu.vector_store %arg6[%c0, %c0_0, %c0_1], %0 {strides = array<i32>} : memref<16x18x64xf32, #tpu.memory_space<vmem>>, vector<16x1x64xf32>,
    %c0_2 = arith.constant 0 : index
    %c17 = arith.constant 17 : index
    %c0_3 = arith.constant 0 : index
    %2 = vector.load %arg6[%c0_2, %c17, %c0_3] : memref<16x18x64xf32, #tpu.memory_space<vmem>>, vector<16x1x64xf32>
    tpu.vector_store %arg6[%c0_2, %c17, %c0_3], %0 {strides = array<i32>} : memref<16x18x64xf32, #tpu.memory_space<vmem>>, vector<16x1x64xf32>,
    %c0_4 = arith.constant 0 : index
    %c0_5 = arith.constant 0 : index
    %c0_6 = arith.constant 0 : index
    %3 = vector.load %arg1[%c0_4, %c0_5, %c0_6] : memref<16x16x64xf32, #tpu.memory_space<vmem>>, vector<16x16x64xf32>
    %c0_7 = arith.constant 0 : index
    %c1 = arith.constant 1 : index
    %c0_8 = arith.constant 0 : index
    %4 = vector.load %arg6[%c0_7, %c1, %c0_8] : memref<16x18x64xf32, #tpu.memory_space<vmem>>, vector<16x16x64xf32>
    tpu.vector_store %arg6[%c0_7, %c1, %c0_8], %3 {strides = array<i32>} : memref<16x18x64xf32, #tpu.memory_space<vmem>>, vector<16x16x64xf32>,
    %cst_9 = arith.constant 0.000000e+00 : f32
    %5 = vector.broadcast %cst_9 : f32 to vector<256x128xf32>
    %c0_10 = arith.constant 0 : index
    %c0_11 = arith.constant 0 : index
    %c0_12 = arith.constant 0 : index
    %6 = vector.load %arg6[%c0_10, %c0_11, %c0_12] : memref<16x18x64xf32, #tpu.memory_space<vmem>>, vector<16x16x64xf32>
    %7 = vector.shape_cast %6 : vector<16x16x64xf32> to vector<256x64xf32>
    %8 = arith.truncf %7 : vector<256x64xf32> to vector<256x64xbf16>
    %c0_13 = arith.constant 0 : index
    %c0_14 = arith.constant 0 : index
    %c0_15 = arith.constant 0 : index
    %9 = vector.load %arg2[%c0_13, %c0_14, %c0_15] : memref<3x64x128xbf16, #tpu.memory_space<vmem>>, vector<1x64x128xbf16>
    %10 = vector.shape_cast %9 : vector<1x64x128xbf16> to vector<64x128xbf16>
    %cst_16 = arith.constant dense<0.000000e+00> : vector<256x128xf32>
    %11 = tpu.matmul %8, %10, %cst_16 {dimension_numbers = #tpu.dot_dimension_numbers<[1], [0], [0], [1], [0, 0, 1, 1], [], []>} : vector<256x64xbf16>, vector<64x128xbf16>, vector<256x128xf32> -> vector<256x128xf32>
    %12 = arith.addf %5, %11 : vector<256x128xf32>
    %c0_17 = arith.constant 0 : index
    %c1_18 = arith.constant 1 : index
    %c0_19 = arith.constant 0 : index
    %13 = vector.load %arg6[%c0_17, %c1_18, %c0_19] : memref<16x18x64xf32, #tpu.memory_space<vmem>>, vector<16x16x64xf32>
    %14 = vector.shape_cast %13 : vector<16x16x64xf32> to vector<256x64xf32>
    %15 = arith.truncf %14 : vector<256x64xf32> to vector<256x64xbf16>
    %c1_20 = arith.constant 1 : index
    %c0_21 = arith.constant 0 : index
    %c0_22 = arith.constant 0 : index
    %16 = vector.load %arg2[%c1_20, %c0_21, %c0_22] : memref<3x64x128xbf16, #tpu.memory_space<vmem>>, vector<1x64x128xbf16>
    %17 = vector.shape_cast %16 : vector<1x64x128xbf16> to vector<64x128xbf16>
    %cst_23 = arith.constant dense<0.000000e+00> : vector<256x128xf32>
    %18 = tpu.matmul %15, %17, %cst_23 {dimension_numbers = #tpu.dot_dimension_numbers<[1], [0], [0], [1], [0, 0, 1, 1], [], []>} : vector<256x64xbf16>, vector<64x128xbf16>, vector<256x128xf32> -> vector<256x128xf32>
    %19 = arith.addf %12, %18 : vector<256x128xf32>
    %c0_24 = arith.constant 0 : index
    %c2 = arith.constant 2 : index
    %c0_25 = arith.constant 0 : index
    %20 = vector.load %arg6[%c0_24, %c2, %c0_25] : memref<16x18x64xf32, #tpu.memory_space<vmem>>, vector<16x16x64xf32>
    %21 = vector.shape_cast %20 : vector<16x16x64xf32> to vector<256x64xf32>
    %22 = arith.truncf %21 : vector<256x64xf32> to vector<256x64xbf16>
    %c2_26 = arith.constant 2 : index
    %c0_27 = arith.constant 0 : index
    %c0_28 = arith.constant 0 : index
    %23 = vector.load %arg2[%c2_26, %c0_27, %c0_28] : memref<3x64x128xbf16, #tpu.memory_space<vmem>>, vector<1x64x128xbf16>
    %24 = vector.shape_cast %23 : vector<1x64x128xbf16> to vector<64x128xbf16>
    %cst_29 = arith.constant dense<0.000000e+00> : vector<256x128xf32>
    %25 = tpu.matmul %22, %24, %cst_29 {dimension_numbers = #tpu.dot_dimension_numbers<[1], [0], [0], [1], [0, 0, 1, 1], [], []>} : vector<256x64xbf16>, vector<64x128xbf16>, vector<256x128xf32> -> vector<256x128xf32>
    %26 = arith.addf %19, %25 : vector<256x128xf32>
    %c0_30 = arith.constant 0 : index
    %c0_31 = arith.constant 0 : index
    %27 = vector.load %arg3[%c0_30, %c0_31] : memref<1x128xf32, #tpu.memory_space<vmem>>, vector<1x128xf32>
    %28 = vector.broadcast %27 : vector<1x128xf32> to vector<256x128xf32>
    %29 = arith.addf %26, %28 : vector<256x128xf32>
    %cst_32 = arith.constant 0.000000e+00 : f32
    %30 = vector.broadcast %cst_32 : f32 to vector<256x128xf32>
    %31 = arith.maximumf %29, %30 : vector<256x128xf32>
    %c0_33 = arith.constant 0 : index
    %c0_34 = arith.constant 0 : index
    %32 = vector.load %arg4[%c0_33, %c0_34] : memref<16x256xf32, #tpu.memory_space<vmem>>, vector<16x256xf32>
    %cst_35 = arith.constant dense<0.000000e+00> : vector<16x128xf32>
    %33 = tpu.matmul %32, %31, %cst_35 {dimension_numbers = #tpu.dot_dimension_numbers<[1], [0], [0], [1], [0, 0, 1, 1], [], []>} : vector<16x256xf32>, vector<256x128xf32>, vector<16x128xf32> -> vector<16x128xf32>
    %c0_36 = arith.constant 0 : index
    %c0_37 = arith.constant 0 : index
    %34 = vector.load %arg5[%c0_36, %c0_37] : memref<16x128xf32, #tpu.memory_space<vmem>>, vector<16x128xf32>
    tpu.vector_store %arg5[%c0_36, %c0_37], %33 {strides = array<i32>} : memref<16x128xf32, #tpu.memory_space<vmem>>, vector<16x128xf32>,
    return
  }
  func.func @transform_0(%arg0: i32) -> (i32, i32, i32) {
    %c0_i32 = arith.constant 0 : i32
    %c0_i32_0 = arith.constant 0 : i32
    %c0_i32_1 = arith.constant 0 : i32
    return %arg0, %c0_i32, %c0_i32_0 : i32, i32, i32
  }
  func.func @transform_1(%arg0: i32) -> (i32, i32, i32) {
    %c0_i32 = arith.constant 0 : i32
    %c0_i32_0 = arith.constant 0 : i32
    %c0_i32_1 = arith.constant 0 : i32
    %c0_i32_2 = arith.constant 0 : i32
    return %c0_i32, %c0_i32_0, %c0_i32_1 : i32, i32, i32
  }
  func.func @transform_2(%arg0: i32) -> (i32, i32) {
    %c0_i32 = arith.constant 0 : i32
    %c0_i32_0 = arith.constant 0 : i32
    %c0_i32_1 = arith.constant 0 : i32
    return %c0_i32, %c0_i32_0 : i32, i32
  }
  func.func @transform_3(%arg0: i32) -> (i32, i32) {
    %c0_i32 = arith.constant 0 : i32
    %c0_i32_0 = arith.constant 0 : i32
    %c0_i32_1 = arith.constant 0 : i32
    return %c0_i32, %c0_i32_0 : i32, i32
  }
  func.func @transform_4(%arg0: i32) -> (i32, i32) {
    %c0_i32 = arith.constant 0 : i32
    %c0_i32_0 = arith.constant 0 : i32
    return %arg0, %c0_i32 : i32, i32
  }
}

module attributes {stable_mosaic.version = 11 : i64} {
  func.func @_imu_lstm_kernel(%arg0: memref<8x8x128xf32, #tpu.memory_space<vmem>>, %arg1: memref<8x8x3xf32, #tpu.memory_space<vmem>>, %arg2: memref<8x8x3xf32, #tpu.memory_space<vmem>>, %arg3: memref<8x8x1xf32, #tpu.memory_space<vmem>>, %arg4: memref<8x1xi32, #tpu.memory_space<vmem>>, %arg5: memref<3x8xf32, #tpu.memory_space<vmem>>, %arg6: memref<3x8xf32, #tpu.memory_space<vmem>>, %arg7: memref<1x8xf32, #tpu.memory_space<vmem>>, %arg8: memref<128x128xf32, #tpu.memory_space<vmem>>, %arg9: memref<8x128xf32, #tpu.memory_space<vmem>>, %arg10: memref<1x128xf32, #tpu.memory_space<vmem>>, %arg11: memref<32x128xf32, #tpu.memory_space<vmem>>, %arg12: memref<1x128xf32, #tpu.memory_space<vmem>>, %arg13: memref<8x256xf32, #tpu.memory_space<vmem>>, %arg14: memref<8x32xf32, #tpu.memory_space<vmem>>, %arg15: memref<8x32xf32, #tpu.memory_space<vmem>>, %arg16: memref<8x8x128xf32, #tpu.memory_space<vmem>>) attributes {dimension_semantics = [], scalar_prefetch = 0 : i64, scratch_operands = 1 : i64, tpu.core_type = #tpu.core_type<tc>} {
    %c0 = arith.constant 0 : index
    %c0_0 = arith.constant 0 : index
    %c0_1 = arith.constant 0 : index
    %0 = vector.load %arg1[%c0, %c0_0, %c0_1] : memref<8x8x3xf32, #tpu.memory_space<vmem>>, vector<8x8x3xf32>
    %1 = vector.shape_cast %0 : vector<8x8x3xf32> to vector<64x3xf32>
    %c0_2 = arith.constant 0 : index
    %c0_3 = arith.constant 0 : index
    %2 = vector.load %arg5[%c0_2, %c0_3] : memref<3x8xf32, #tpu.memory_space<vmem>>, vector<3x8xf32>
    %cst = arith.constant dense<0.000000e+00> : vector<64x8xf32>
    %3 = tpu.matmul %1, %2, %cst {dimension_numbers = #tpu.dot_dimension_numbers<[1], [0], [0], [1], [0, 0, 1, 1], [], []>} : vector<64x3xf32>, vector<3x8xf32>, vector<64x8xf32> -> vector<64x8xf32>
    %c0_4 = arith.constant 0 : index
    %c0_5 = arith.constant 0 : index
    %c0_6 = arith.constant 0 : index
    %4 = vector.load %arg2[%c0_4, %c0_5, %c0_6] : memref<8x8x3xf32, #tpu.memory_space<vmem>>, vector<8x8x3xf32>
    %5 = vector.shape_cast %4 : vector<8x8x3xf32> to vector<64x3xf32>
    %c0_7 = arith.constant 0 : index
    %c0_8 = arith.constant 0 : index
    %6 = vector.load %arg6[%c0_7, %c0_8] : memref<3x8xf32, #tpu.memory_space<vmem>>, vector<3x8xf32>
    %cst_9 = arith.constant dense<0.000000e+00> : vector<64x8xf32>
    %7 = tpu.matmul %5, %6, %cst_9 {dimension_numbers = #tpu.dot_dimension_numbers<[1], [0], [0], [1], [0, 0, 1, 1], [], []>} : vector<64x3xf32>, vector<3x8xf32>, vector<64x8xf32> -> vector<64x8xf32>
    %8 = arith.addf %3, %7 : vector<64x8xf32>
    %c0_10 = arith.constant 0 : index
    %c0_11 = arith.constant 0 : index
    %9 = vector.load %arg7[%c0_10, %c0_11] : memref<1x8xf32, #tpu.memory_space<vmem>>, vector<1x8xf32>
    %10 = vector.broadcast %9 : vector<1x8xf32> to vector<64x8xf32>
    %11 = arith.addf %8, %10 : vector<64x8xf32>
    %cst_12 = arith.constant 0.000000e+00 : f32
    %12 = vector.broadcast %cst_12 : f32 to vector<64x8xf32>
    %13 = arith.maximumf %11, %12 : vector<64x8xf32>
    %c0_13 = arith.constant 0 : index
    %c0_14 = arith.constant 0 : index
    %c0_15 = arith.constant 0 : index
    %14 = vector.load %arg0[%c0_13, %c0_14, %c0_15] : memref<8x8x128xf32, #tpu.memory_space<vmem>>, vector<8x8x128xf32>
    %15 = vector.shape_cast %14 : vector<8x8x128xf32> to vector<64x128xf32>
    %c0_16 = arith.constant 0 : index
    %c0_17 = arith.constant 0 : index
    %16 = vector.load %arg8[%c0_16, %c0_17] : memref<128x128xf32, #tpu.memory_space<vmem>>, vector<128x128xf32>
    %cst_18 = arith.constant dense<0.000000e+00> : vector<64x128xf32>
    %17 = tpu.matmul %15, %16, %cst_18 {dimension_numbers = #tpu.dot_dimension_numbers<[1], [0], [0], [1], [0, 0, 1, 1], [], []>} : vector<64x128xf32>, vector<128x128xf32>, vector<64x128xf32> -> vector<64x128xf32>
    %c0_19 = arith.constant 0 : index
    %c0_20 = arith.constant 0 : index
    %18 = vector.load %arg9[%c0_19, %c0_20] : memref<8x128xf32, #tpu.memory_space<vmem>>, vector<8x128xf32>
    %cst_21 = arith.constant dense<0.000000e+00> : vector<64x128xf32>
    %19 = tpu.matmul %13, %18, %cst_21 {dimension_numbers = #tpu.dot_dimension_numbers<[1], [0], [0], [1], [0, 0, 1, 1], [], []>} : vector<64x8xf32>, vector<8x128xf32>, vector<64x128xf32> -> vector<64x128xf32>
    %20 = arith.addf %17, %19 : vector<64x128xf32>
    %c0_22 = arith.constant 0 : index
    %c0_23 = arith.constant 0 : index
    %c0_24 = arith.constant 0 : index
    %21 = vector.load %arg3[%c0_22, %c0_23, %c0_24] : memref<8x8x1xf32, #tpu.memory_space<vmem>>, vector<8x8x1xf32>
    %22 = vector.shape_cast %21 : vector<8x8x1xf32> to vector<64x1xf32>
    %c0_25 = arith.constant 0 : index
    %c0_26 = arith.constant 0 : index
    %23 = vector.load %arg10[%c0_25, %c0_26] : memref<1x128xf32, #tpu.memory_space<vmem>>, vector<1x128xf32>
    %24 = vector.broadcast %22 : vector<64x1xf32> to vector<64x128xf32>
    %25 = vector.broadcast %23 : vector<1x128xf32> to vector<64x128xf32>
    %26 = arith.mulf %24, %25 : vector<64x128xf32>
    %27 = arith.addf %20, %26 : vector<64x128xf32>
    %c0_27 = arith.constant 0 : index
    %c0_28 = arith.constant 0 : index
    %28 = vector.load %arg12[%c0_27, %c0_28] : memref<1x128xf32, #tpu.memory_space<vmem>>, vector<1x128xf32>
    %29 = vector.broadcast %28 : vector<1x128xf32> to vector<64x128xf32>
    %30 = arith.addf %27, %29 : vector<64x128xf32>
    %31 = vector.shape_cast %30 : vector<64x128xf32> to vector<8x8x128xf32>
    %c0_29 = arith.constant 0 : index
    %c0_30 = arith.constant 0 : index
    %c0_31 = arith.constant 0 : index
    %32 = vector.load %arg16[%c0_29, %c0_30, %c0_31] : memref<8x8x128xf32, #tpu.memory_space<vmem>>, vector<8x8x128xf32>
    tpu.vector_store %arg16[%c0_29, %c0_30, %c0_31], %31 {strides = array<i32>} : memref<8x8x128xf32, #tpu.memory_space<vmem>>, vector<8x8x128xf32>,
    %c0_32 = arith.constant 0 : index
    %c0_33 = arith.constant 0 : index
    %33 = vector.load %arg4[%c0_32, %c0_33] : memref<8x1xi32, #tpu.memory_space<vmem>>, vector<8x1xi32>
    %c0_34 = arith.constant 0 : index
    %c0_35 = arith.constant 0 : index
    %34 = vector.load %arg11[%c0_34, %c0_35] : memref<32x128xf32, #tpu.memory_space<vmem>>, vector<32x128xf32>
    %cst_36 = arith.constant 0.000000e+00 : f32
    %35 = vector.broadcast %cst_36 : f32 to vector<8x32xf32>
    %cst_37 = arith.constant 0.000000e+00 : f32
    %36 = vector.broadcast %cst_37 : f32 to vector<8x32xf32>
    %c0_i32 = arith.constant 0 : i32
    %c4_i32 = arith.constant 4 : i32
    %37 = arith.muli %c0_i32, %c4_i32 : i32
    %c0_i32_38 = arith.constant 0 : i32
    %38 = arith.addi %37, %c0_i32_38 : i32
    %39 = arith.index_cast %38 : i32 to index
    %c0_39 = arith.constant 0 : index
    %c0_40 = arith.constant 0 : index
    %40 = vector.load %arg16[%39, %c0_39, %c0_40] : memref<8x8x128xf32, #tpu.memory_space<vmem>>, vector<1x8x128xf32>
    %41 = vector.shape_cast %40 : vector<1x8x128xf32> to vector<8x128xf32>
    %cst_41 = arith.constant dense<0.000000e+00> : vector<8x128xf32>
    %42 = tpu.matmul %35, %34, %cst_41 {dimension_numbers = #tpu.dot_dimension_numbers<[1], [0], [0], [1], [0, 0, 1, 1], [], []>} : vector<8x32xf32>, vector<32x128xf32>, vector<8x128xf32> -> vector<8x128xf32>
    %43 = arith.addf %41, %42 : vector<8x128xf32>
    %44 = vector.extract_strided_slice %43 {offsets = [0, 0], sizes = [8, 64], strides = [1, 1]} : vector<8x128xf32> to vector<8x64xf32>
    %45 = arith.negf %44 : vector<8x64xf32>
    %46 = math.exp %45 : vector<8x64xf32>
    %cst_42 = arith.constant 1.000000e+00 : f32
    %47 = vector.broadcast %cst_42 : f32 to vector<8x64xf32>
    %48 = arith.addf %47, %46 : vector<8x64xf32>
    %49 = arith.divf %47, %48 : vector<8x64xf32>
    %50 = vector.extract_strided_slice %43 {offsets = [0, 64], sizes = [8, 32], strides = [1, 1]} : vector<8x128xf32> to vector<8x32xf32>
    %51 = math.tanh %50 : vector<8x32xf32>
    %52 = vector.extract_strided_slice %43 {offsets = [0, 96], sizes = [8, 32], strides = [1, 1]} : vector<8x128xf32> to vector<8x32xf32>
    %53 = arith.negf %52 : vector<8x32xf32>
    %54 = math.exp %53 : vector<8x32xf32>
    %cst_43 = arith.constant 1.000000e+00 : f32
    %55 = vector.broadcast %cst_43 : f32 to vector<8x32xf32>
    %56 = arith.addf %55, %54 : vector<8x32xf32>
    %57 = arith.divf %55, %56 : vector<8x32xf32>
    %58 = vector.extract_strided_slice %49 {offsets = [0, 32], sizes = [8, 32], strides = [1, 1]} : vector<8x64xf32> to vector<8x32xf32>
    %59 = arith.mulf %58, %36 : vector<8x32xf32>
    %60 = vector.extract_strided_slice %49 {offsets = [0, 0], sizes = [8, 32], strides = [1, 1]} : vector<8x64xf32> to vector<8x32xf32>
    %61 = arith.mulf %60, %51 : vector<8x32xf32>
    %62 = arith.addf %59, %61 : vector<8x32xf32>
    %63 = math.tanh %62 : vector<8x32xf32>
    %64 = arith.mulf %57, %63 : vector<8x32xf32>
    %65 = vector.broadcast %38 : i32 to vector<8x1xi32>
    %66 = arith.cmpi slt, %65, %33 : vector<8x1xi32>
    %cst_44 = arith.constant 0.000000e+00 : f32
    %67 = vector.shape_cast %66 : vector<8x1xi1> to vector<8x1xi1>
    %68 = vector.broadcast %67 : vector<8x1xi1> to vector<8x32xi1>
    %69 = vector.broadcast %cst_44 : f32 to vector<8x32xf32>
    %70 = arith.select %68, %64, %69 : vector<8x32xi1>, vector<8x32xf32>
    %71 = vector.shape_cast %66 : vector<8x1xi1> to vector<8x1xi1>
    %72 = vector.broadcast %71 : vector<8x1xi1> to vector<8x32xi1>
    %73 = arith.select %72, %64, %35 : vector<8x32xi1>, vector<8x32xf32>
    %74 = vector.shape_cast %66 : vector<8x1xi1> to vector<8x1xi1>
    %75 = vector.broadcast %74 : vector<8x1xi1> to vector<8x32xi1>
    %76 = arith.select %75, %62, %36 : vector<8x32xi1>, vector<8x32xf32>
    %c4_i32_45 = arith.constant 4 : i32
    %77 = arith.muli %c0_i32, %c4_i32_45 : i32
    %c1_i32 = arith.constant 1 : i32
    %78 = arith.addi %77, %c1_i32 : i32
    %79 = arith.index_cast %78 : i32 to index
    %c0_46 = arith.constant 0 : index
    %c0_47 = arith.constant 0 : index
    %80 = vector.load %arg16[%79, %c0_46, %c0_47] : memref<8x8x128xf32, #tpu.memory_space<vmem>>, vector<1x8x128xf32>
    %81 = vector.shape_cast %80 : vector<1x8x128xf32> to vector<8x128xf32>
    %cst_48 = arith.constant dense<0.000000e+00> : vector<8x128xf32>
    %82 = tpu.matmul %73, %34, %cst_48 {dimension_numbers = #tpu.dot_dimension_numbers<[1], [0], [0], [1], [0, 0, 1, 1], [], []>} : vector<8x32xf32>, vector<32x128xf32>, vector<8x128xf32> -> vector<8x128xf32>
    %83 = arith.addf %81, %82 : vector<8x128xf32>
    %84 = vector.extract_strided_slice %83 {offsets = [0, 0], sizes = [8, 64], strides = [1, 1]} : vector<8x128xf32> to vector<8x64xf32>
    %85 = arith.negf %84 : vector<8x64xf32>
    %86 = math.exp %85 : vector<8x64xf32>
    %cst_49 = arith.constant 1.000000e+00 : f32
    %87 = vector.broadcast %cst_49 : f32 to vector<8x64xf32>
    %88 = arith.addf %87, %86 : vector<8x64xf32>
    %89 = arith.divf %87, %88 : vector<8x64xf32>
    %90 = vector.extract_strided_slice %83 {offsets = [0, 64], sizes = [8, 32], strides = [1, 1]} : vector<8x128xf32> to vector<8x32xf32>
    %91 = math.tanh %90 : vector<8x32xf32>
    %92 = vector.extract_strided_slice %83 {offsets = [0, 96], sizes = [8, 32], strides = [1, 1]} : vector<8x128xf32> to vector<8x32xf32>
    %93 = arith.negf %92 : vector<8x32xf32>
    %94 = math.exp %93 : vector<8x32xf32>
    %cst_50 = arith.constant 1.000000e+00 : f32
    %95 = vector.broadcast %cst_50 : f32 to vector<8x32xf32>
    %96 = arith.addf %95, %94 : vector<8x32xf32>
    %97 = arith.divf %95, %96 : vector<8x32xf32>
    %98 = vector.extract_strided_slice %89 {offsets = [0, 32], sizes = [8, 32], strides = [1, 1]} : vector<8x64xf32> to vector<8x32xf32>
    %99 = arith.mulf %98, %76 : vector<8x32xf32>
    %100 = vector.extract_strided_slice %89 {offsets = [0, 0], sizes = [8, 32], strides = [1, 1]} : vector<8x64xf32> to vector<8x32xf32>
    %101 = arith.mulf %100, %91 : vector<8x32xf32>
    %102 = arith.addf %99, %101 : vector<8x32xf32>
    %103 = math.tanh %102 : vector<8x32xf32>
    %104 = arith.mulf %97, %103 : vector<8x32xf32>
    %105 = vector.broadcast %78 : i32 to vector<8x1xi32>
    %106 = arith.cmpi slt, %105, %33 : vector<8x1xi32>
    %cst_51 = arith.constant 0.000000e+00 : f32
    %107 = vector.shape_cast %106 : vector<8x1xi1> to vector<8x1xi1>
    %108 = vector.broadcast %107 : vector<8x1xi1> to vector<8x32xi1>
    %109 = vector.broadcast %cst_51 : f32 to vector<8x32xf32>
    %110 = arith.select %108, %104, %109 : vector<8x32xi1>, vector<8x32xf32>
    %111 = vector.shape_cast %106 : vector<8x1xi1> to vector<8x1xi1>
    %112 = vector.broadcast %111 : vector<8x1xi1> to vector<8x32xi1>
    %113 = arith.select %112, %104, %73 : vector<8x32xi1>, vector<8x32xf32>
    %114 = vector.shape_cast %106 : vector<8x1xi1> to vector<8x1xi1>
    %115 = vector.broadcast %114 : vector<8x1xi1> to vector<8x32xi1>
    %116 = arith.select %115, %102, %76 : vector<8x32xi1>, vector<8x32xf32>
    %c4_i32_52 = arith.constant 4 : i32
    %117 = arith.muli %c0_i32, %c4_i32_52 : i32
    %c2_i32 = arith.constant 2 : i32
    %118 = arith.addi %117, %c2_i32 : i32
    %119 = arith.index_cast %118 : i32 to index
    %c0_53 = arith.constant 0 : index
    %c0_54 = arith.constant 0 : index
    %120 = vector.load %arg16[%119, %c0_53, %c0_54] : memref<8x8x128xf32, #tpu.memory_space<vmem>>, vector<1x8x128xf32>
    %121 = vector.shape_cast %120 : vector<1x8x128xf32> to vector<8x128xf32>
    %cst_55 = arith.constant dense<0.000000e+00> : vector<8x128xf32>
    %122 = tpu.matmul %113, %34, %cst_55 {dimension_numbers = #tpu.dot_dimension_numbers<[1], [0], [0], [1], [0, 0, 1, 1], [], []>} : vector<8x32xf32>, vector<32x128xf32>, vector<8x128xf32> -> vector<8x128xf32>
    %123 = arith.addf %121, %122 : vector<8x128xf32>
    %124 = vector.extract_strided_slice %123 {offsets = [0, 0], sizes = [8, 64], strides = [1, 1]} : vector<8x128xf32> to vector<8x64xf32>
    %125 = arith.negf %124 : vector<8x64xf32>
    %126 = math.exp %125 : vector<8x64xf32>
    %cst_56 = arith.constant 1.000000e+00 : f32
    %127 = vector.broadcast %cst_56 : f32 to vector<8x64xf32>
    %128 = arith.addf %127, %126 : vector<8x64xf32>
    %129 = arith.divf %127, %128 : vector<8x64xf32>
    %130 = vector.extract_strided_slice %123 {offsets = [0, 64], sizes = [8, 32], strides = [1, 1]} : vector<8x128xf32> to vector<8x32xf32>
    %131 = math.tanh %130 : vector<8x32xf32>
    %132 = vector.extract_strided_slice %123 {offsets = [0, 96], sizes = [8, 32], strides = [1, 1]} : vector<8x128xf32> to vector<8x32xf32>
    %133 = arith.negf %132 : vector<8x32xf32>
    %134 = math.exp %133 : vector<8x32xf32>
    %cst_57 = arith.constant 1.000000e+00 : f32
    %135 = vector.broadcast %cst_57 : f32 to vector<8x32xf32>
    %136 = arith.addf %135, %134 : vector<8x32xf32>
    %137 = arith.divf %135, %136 : vector<8x32xf32>
    %138 = vector.extract_strided_slice %129 {offsets = [0, 32], sizes = [8, 32], strides = [1, 1]} : vector<8x64xf32> to vector<8x32xf32>
    %139 = arith.mulf %138, %116 : vector<8x32xf32>
    %140 = vector.extract_strided_slice %129 {offsets = [0, 0], sizes = [8, 32], strides = [1, 1]} : vector<8x64xf32> to vector<8x32xf32>
    %141 = arith.mulf %140, %131 : vector<8x32xf32>
    %142 = arith.addf %139, %141 : vector<8x32xf32>
    %143 = math.tanh %142 : vector<8x32xf32>
    %144 = arith.mulf %137, %143 : vector<8x32xf32>
    %145 = vector.broadcast %118 : i32 to vector<8x1xi32>
    %146 = arith.cmpi slt, %145, %33 : vector<8x1xi32>
    %cst_58 = arith.constant 0.000000e+00 : f32
    %147 = vector.shape_cast %146 : vector<8x1xi1> to vector<8x1xi1>
    %148 = vector.broadcast %147 : vector<8x1xi1> to vector<8x32xi1>
    %149 = vector.broadcast %cst_58 : f32 to vector<8x32xf32>
    %150 = arith.select %148, %144, %149 : vector<8x32xi1>, vector<8x32xf32>
    %151 = vector.shape_cast %146 : vector<8x1xi1> to vector<8x1xi1>
    %152 = vector.broadcast %151 : vector<8x1xi1> to vector<8x32xi1>
    %153 = arith.select %152, %144, %113 : vector<8x32xi1>, vector<8x32xf32>
    %154 = vector.shape_cast %146 : vector<8x1xi1> to vector<8x1xi1>
    %155 = vector.broadcast %154 : vector<8x1xi1> to vector<8x32xi1>
    %156 = arith.select %155, %142, %116 : vector<8x32xi1>, vector<8x32xf32>
    %c4_i32_59 = arith.constant 4 : i32
    %157 = arith.muli %c0_i32, %c4_i32_59 : i32
    %c3_i32 = arith.constant 3 : i32
    %158 = arith.addi %157, %c3_i32 : i32
    %159 = arith.index_cast %158 : i32 to index
    %c0_60 = arith.constant 0 : index
    %c0_61 = arith.constant 0 : index
    %160 = vector.load %arg16[%159, %c0_60, %c0_61] : memref<8x8x128xf32, #tpu.memory_space<vmem>>, vector<1x8x128xf32>
    %161 = vector.shape_cast %160 : vector<1x8x128xf32> to vector<8x128xf32>
    %cst_62 = arith.constant dense<0.000000e+00> : vector<8x128xf32>
    %162 = tpu.matmul %153, %34, %cst_62 {dimension_numbers = #tpu.dot_dimension_numbers<[1], [0], [0], [1], [0, 0, 1, 1], [], []>} : vector<8x32xf32>, vector<32x128xf32>, vector<8x128xf32> -> vector<8x128xf32>
    %163 = arith.addf %161, %162 : vector<8x128xf32>
    %164 = vector.extract_strided_slice %163 {offsets = [0, 0], sizes = [8, 64], strides = [1, 1]} : vector<8x128xf32> to vector<8x64xf32>
    %165 = arith.negf %164 : vector<8x64xf32>
    %166 = math.exp %165 : vector<8x64xf32>
    %cst_63 = arith.constant 1.000000e+00 : f32
    %167 = vector.broadcast %cst_63 : f32 to vector<8x64xf32>
    %168 = arith.addf %167, %166 : vector<8x64xf32>
    %169 = arith.divf %167, %168 : vector<8x64xf32>
    %170 = vector.extract_strided_slice %163 {offsets = [0, 64], sizes = [8, 32], strides = [1, 1]} : vector<8x128xf32> to vector<8x32xf32>
    %171 = math.tanh %170 : vector<8x32xf32>
    %172 = vector.extract_strided_slice %163 {offsets = [0, 96], sizes = [8, 32], strides = [1, 1]} : vector<8x128xf32> to vector<8x32xf32>
    %173 = arith.negf %172 : vector<8x32xf32>
    %174 = math.exp %173 : vector<8x32xf32>
    %cst_64 = arith.constant 1.000000e+00 : f32
    %175 = vector.broadcast %cst_64 : f32 to vector<8x32xf32>
    %176 = arith.addf %175, %174 : vector<8x32xf32>
    %177 = arith.divf %175, %176 : vector<8x32xf32>
    %178 = vector.extract_strided_slice %169 {offsets = [0, 32], sizes = [8, 32], strides = [1, 1]} : vector<8x64xf32> to vector<8x32xf32>
    %179 = arith.mulf %178, %156 : vector<8x32xf32>
    %180 = vector.extract_strided_slice %169 {offsets = [0, 0], sizes = [8, 32], strides = [1, 1]} : vector<8x64xf32> to vector<8x32xf32>
    %181 = arith.mulf %180, %171 : vector<8x32xf32>
    %182 = arith.addf %179, %181 : vector<8x32xf32>
    %183 = math.tanh %182 : vector<8x32xf32>
    %184 = arith.mulf %177, %183 : vector<8x32xf32>
    %185 = vector.broadcast %158 : i32 to vector<8x1xi32>
    %186 = arith.cmpi slt, %185, %33 : vector<8x1xi32>
    %cst_65 = arith.constant 0.000000e+00 : f32
    %187 = vector.shape_cast %186 : vector<8x1xi1> to vector<8x1xi1>
    %188 = vector.broadcast %187 : vector<8x1xi1> to vector<8x32xi1>
    %189 = vector.broadcast %cst_65 : f32 to vector<8x32xf32>
    %190 = arith.select %188, %184, %189 : vector<8x32xi1>, vector<8x32xf32>
    %191 = vector.shape_cast %186 : vector<8x1xi1> to vector<8x1xi1>
    %192 = vector.broadcast %191 : vector<8x1xi1> to vector<8x32xi1>
    %193 = arith.select %192, %184, %153 : vector<8x32xi1>, vector<8x32xf32>
    %194 = vector.shape_cast %186 : vector<8x1xi1> to vector<8x1xi1>
    %195 = vector.broadcast %194 : vector<8x1xi1> to vector<8x32xi1>
    %196 = arith.select %195, %182, %156 : vector<8x32xi1>, vector<8x32xf32>
    %c128_i32 = arith.constant 128 : i32
    %197 = arith.muli %c0_i32, %c128_i32 : i32
    %198 = tpu.assume_multiple %197, 128 : i32
    %199 = tpu.concatenate %70, %110, %150, %190 in 1 : vector<8x32xf32>, vector<8x32xf32>, vector<8x32xf32>, vector<8x32xf32> -> vector<8x128xf32>
    %c0_66 = arith.constant 0 : index
    %200 = arith.index_cast %198 : i32 to index
    %201 = vector.load %arg13[%c0_66, %200] : memref<8x256xf32, #tpu.memory_space<vmem>>, vector<8x128xf32>
    tpu.vector_store %arg13[%c0_66, %200], %199 {strides = array<i32>} : memref<8x256xf32, #tpu.memory_space<vmem>>, vector<8x128xf32>,
    %c1_i32_67 = arith.constant 1 : i32
    %c4_i32_68 = arith.constant 4 : i32
    %202 = arith.muli %c1_i32_67, %c4_i32_68 : i32
    %c0_i32_69 = arith.constant 0 : i32
    %203 = arith.addi %202, %c0_i32_69 : i32
    %204 = arith.index_cast %203 : i32 to index
    %c0_70 = arith.constant 0 : index
    %c0_71 = arith.constant 0 : index
    %205 = vector.load %arg16[%204, %c0_70, %c0_71] : memref<8x8x128xf32, #tpu.memory_space<vmem>>, vector<1x8x128xf32>
    %206 = vector.shape_cast %205 : vector<1x8x128xf32> to vector<8x128xf32>
    %cst_72 = arith.constant dense<0.000000e+00> : vector<8x128xf32>
    %207 = tpu.matmul %193, %34, %cst_72 {dimension_numbers = #tpu.dot_dimension_numbers<[1], [0], [0], [1], [0, 0, 1, 1], [], []>} : vector<8x32xf32>, vector<32x128xf32>, vector<8x128xf32> -> vector<8x128xf32>
    %208 = arith.addf %206, %207 : vector<8x128xf32>
    %209 = vector.extract_strided_slice %208 {offsets = [0, 0], sizes = [8, 64], strides = [1, 1]} : vector<8x128xf32> to vector<8x64xf32>
    %210 = arith.negf %209 : vector<8x64xf32>
    %211 = math.exp %210 : vector<8x64xf32>
    %cst_73 = arith.constant 1.000000e+00 : f32
    %212 = vector.broadcast %cst_73 : f32 to vector<8x64xf32>
    %213 = arith.addf %212, %211 : vector<8x64xf32>
    %214 = arith.divf %212, %213 : vector<8x64xf32>
    %215 = vector.extract_strided_slice %208 {offsets = [0, 64], sizes = [8, 32], strides = [1, 1]} : vector<8x128xf32> to vector<8x32xf32>
    %216 = math.tanh %215 : vector<8x32xf32>
    %217 = vector.extract_strided_slice %208 {offsets = [0, 96], sizes = [8, 32], strides = [1, 1]} : vector<8x128xf32> to vector<8x32xf32>
    %218 = arith.negf %217 : vector<8x32xf32>
    %219 = math.exp %218 : vector<8x32xf32>
    %cst_74 = arith.constant 1.000000e+00 : f32
    %220 = vector.broadcast %cst_74 : f32 to vector<8x32xf32>
    %221 = arith.addf %220, %219 : vector<8x32xf32>
    %222 = arith.divf %220, %221 : vector<8x32xf32>
    %223 = vector.extract_strided_slice %214 {offsets = [0, 32], sizes = [8, 32], strides = [1, 1]} : vector<8x64xf32> to vector<8x32xf32>
    %224 = arith.mulf %223, %196 : vector<8x32xf32>
    %225 = vector.extract_strided_slice %214 {offsets = [0, 0], sizes = [8, 32], strides = [1, 1]} : vector<8x64xf32> to vector<8x32xf32>
    %226 = arith.mulf %225, %216 : vector<8x32xf32>
    %227 = arith.addf %224, %226 : vector<8x32xf32>
    %228 = math.tanh %227 : vector<8x32xf32>
    %229 = arith.mulf %222, %228 : vector<8x32xf32>
    %230 = vector.broadcast %203 : i32 to vector<8x1xi32>
    %231 = arith.cmpi slt, %230, %33 : vector<8x1xi32>
    %cst_75 = arith.constant 0.000000e+00 : f32
    %232 = vector.shape_cast %231 : vector<8x1xi1> to vector<8x1xi1>
    %233 = vector.broadcast %232 : vector<8x1xi1> to vector<8x32xi1>
    %234 = vector.broadcast %cst_75 : f32 to vector<8x32xf32>
    %235 = arith.select %233, %229, %234 : vector<8x32xi1>, vector<8x32xf32>
    %236 = vector.shape_cast %231 : vector<8x1xi1> to vector<8x1xi1>
    %237 = vector.broadcast %236 : vector<8x1xi1> to vector<8x32xi1>
    %238 = arith.select %237, %229, %193 : vector<8x32xi1>, vector<8x32xf32>
    %239 = vector.shape_cast %231 : vector<8x1xi1> to vector<8x1xi1>
    %240 = vector.broadcast %239 : vector<8x1xi1> to vector<8x32xi1>
    %241 = arith.select %240, %227, %196 : vector<8x32xi1>, vector<8x32xf32>
    %c4_i32_76 = arith.constant 4 : i32
    %242 = arith.muli %c1_i32_67, %c4_i32_76 : i32
    %c1_i32_77 = arith.constant 1 : i32
    %243 = arith.addi %242, %c1_i32_77 : i32
    %244 = arith.index_cast %243 : i32 to index
    %c0_78 = arith.constant 0 : index
    %c0_79 = arith.constant 0 : index
    %245 = vector.load %arg16[%244, %c0_78, %c0_79] : memref<8x8x128xf32, #tpu.memory_space<vmem>>, vector<1x8x128xf32>
    %246 = vector.shape_cast %245 : vector<1x8x128xf32> to vector<8x128xf32>
    %cst_80 = arith.constant dense<0.000000e+00> : vector<8x128xf32>
    %247 = tpu.matmul %238, %34, %cst_80 {dimension_numbers = #tpu.dot_dimension_numbers<[1], [0], [0], [1], [0, 0, 1, 1], [], []>} : vector<8x32xf32>, vector<32x128xf32>, vector<8x128xf32> -> vector<8x128xf32>
    %248 = arith.addf %246, %247 : vector<8x128xf32>
    %249 = vector.extract_strided_slice %248 {offsets = [0, 0], sizes = [8, 64], strides = [1, 1]} : vector<8x128xf32> to vector<8x64xf32>
    %250 = arith.negf %249 : vector<8x64xf32>
    %251 = math.exp %250 : vector<8x64xf32>
    %cst_81 = arith.constant 1.000000e+00 : f32
    %252 = vector.broadcast %cst_81 : f32 to vector<8x64xf32>
    %253 = arith.addf %252, %251 : vector<8x64xf32>
    %254 = arith.divf %252, %253 : vector<8x64xf32>
    %255 = vector.extract_strided_slice %248 {offsets = [0, 64], sizes = [8, 32], strides = [1, 1]} : vector<8x128xf32> to vector<8x32xf32>
    %256 = math.tanh %255 : vector<8x32xf32>
    %257 = vector.extract_strided_slice %248 {offsets = [0, 96], sizes = [8, 32], strides = [1, 1]} : vector<8x128xf32> to vector<8x32xf32>
    %258 = arith.negf %257 : vector<8x32xf32>
    %259 = math.exp %258 : vector<8x32xf32>
    %cst_82 = arith.constant 1.000000e+00 : f32
    %260 = vector.broadcast %cst_82 : f32 to vector<8x32xf32>
    %261 = arith.addf %260, %259 : vector<8x32xf32>
    %262 = arith.divf %260, %261 : vector<8x32xf32>
    %263 = vector.extract_strided_slice %254 {offsets = [0, 32], sizes = [8, 32], strides = [1, 1]} : vector<8x64xf32> to vector<8x32xf32>
    %264 = arith.mulf %263, %241 : vector<8x32xf32>
    %265 = vector.extract_strided_slice %254 {offsets = [0, 0], sizes = [8, 32], strides = [1, 1]} : vector<8x64xf32> to vector<8x32xf32>
    %266 = arith.mulf %265, %256 : vector<8x32xf32>
    %267 = arith.addf %264, %266 : vector<8x32xf32>
    %268 = math.tanh %267 : vector<8x32xf32>
    %269 = arith.mulf %262, %268 : vector<8x32xf32>
    %270 = vector.broadcast %243 : i32 to vector<8x1xi32>
    %271 = arith.cmpi slt, %270, %33 : vector<8x1xi32>
    %cst_83 = arith.constant 0.000000e+00 : f32
    %272 = vector.shape_cast %271 : vector<8x1xi1> to vector<8x1xi1>
    %273 = vector.broadcast %272 : vector<8x1xi1> to vector<8x32xi1>
    %274 = vector.broadcast %cst_83 : f32 to vector<8x32xf32>
    %275 = arith.select %273, %269, %274 : vector<8x32xi1>, vector<8x32xf32>
    %276 = vector.shape_cast %271 : vector<8x1xi1> to vector<8x1xi1>
    %277 = vector.broadcast %276 : vector<8x1xi1> to vector<8x32xi1>
    %278 = arith.select %277, %269, %238 : vector<8x32xi1>, vector<8x32xf32>
    %279 = vector.shape_cast %271 : vector<8x1xi1> to vector<8x1xi1>
    %280 = vector.broadcast %279 : vector<8x1xi1> to vector<8x32xi1>
    %281 = arith.select %280, %267, %241 : vector<8x32xi1>, vector<8x32xf32>
    %c4_i32_84 = arith.constant 4 : i32
    %282 = arith.muli %c1_i32_67, %c4_i32_84 : i32
    %c2_i32_85 = arith.constant 2 : i32
    %283 = arith.addi %282, %c2_i32_85 : i32
    %284 = arith.index_cast %283 : i32 to index
    %c0_86 = arith.constant 0 : index
    %c0_87 = arith.constant 0 : index
    %285 = vector.load %arg16[%284, %c0_86, %c0_87] : memref<8x8x128xf32, #tpu.memory_space<vmem>>, vector<1x8x128xf32>
    %286 = vector.shape_cast %285 : vector<1x8x128xf32> to vector<8x128xf32>
    %cst_88 = arith.constant dense<0.000000e+00> : vector<8x128xf32>
    %287 = tpu.matmul %278, %34, %cst_88 {dimension_numbers = #tpu.dot_dimension_numbers<[1], [0], [0], [1], [0, 0, 1, 1], [], []>} : vector<8x32xf32>, vector<32x128xf32>, vector<8x128xf32> -> vector<8x128xf32>
    %288 = arith.addf %286, %287 : vector<8x128xf32>
    %289 = vector.extract_strided_slice %288 {offsets = [0, 0], sizes = [8, 64], strides = [1, 1]} : vector<8x128xf32> to vector<8x64xf32>
    %290 = arith.negf %289 : vector<8x64xf32>
    %291 = math.exp %290 : vector<8x64xf32>
    %cst_89 = arith.constant 1.000000e+00 : f32
    %292 = vector.broadcast %cst_89 : f32 to vector<8x64xf32>
    %293 = arith.addf %292, %291 : vector<8x64xf32>
    %294 = arith.divf %292, %293 : vector<8x64xf32>
    %295 = vector.extract_strided_slice %288 {offsets = [0, 64], sizes = [8, 32], strides = [1, 1]} : vector<8x128xf32> to vector<8x32xf32>
    %296 = math.tanh %295 : vector<8x32xf32>
    %297 = vector.extract_strided_slice %288 {offsets = [0, 96], sizes = [8, 32], strides = [1, 1]} : vector<8x128xf32> to vector<8x32xf32>
    %298 = arith.negf %297 : vector<8x32xf32>
    %299 = math.exp %298 : vector<8x32xf32>
    %cst_90 = arith.constant 1.000000e+00 : f32
    %300 = vector.broadcast %cst_90 : f32 to vector<8x32xf32>
    %301 = arith.addf %300, %299 : vector<8x32xf32>
    %302 = arith.divf %300, %301 : vector<8x32xf32>
    %303 = vector.extract_strided_slice %294 {offsets = [0, 32], sizes = [8, 32], strides = [1, 1]} : vector<8x64xf32> to vector<8x32xf32>
    %304 = arith.mulf %303, %281 : vector<8x32xf32>
    %305 = vector.extract_strided_slice %294 {offsets = [0, 0], sizes = [8, 32], strides = [1, 1]} : vector<8x64xf32> to vector<8x32xf32>
    %306 = arith.mulf %305, %296 : vector<8x32xf32>
    %307 = arith.addf %304, %306 : vector<8x32xf32>
    %308 = math.tanh %307 : vector<8x32xf32>
    %309 = arith.mulf %302, %308 : vector<8x32xf32>
    %310 = vector.broadcast %283 : i32 to vector<8x1xi32>
    %311 = arith.cmpi slt, %310, %33 : vector<8x1xi32>
    %cst_91 = arith.constant 0.000000e+00 : f32
    %312 = vector.shape_cast %311 : vector<8x1xi1> to vector<8x1xi1>
    %313 = vector.broadcast %312 : vector<8x1xi1> to vector<8x32xi1>
    %314 = vector.broadcast %cst_91 : f32 to vector<8x32xf32>
    %315 = arith.select %313, %309, %314 : vector<8x32xi1>, vector<8x32xf32>
    %316 = vector.shape_cast %311 : vector<8x1xi1> to vector<8x1xi1>
    %317 = vector.broadcast %316 : vector<8x1xi1> to vector<8x32xi1>
    %318 = arith.select %317, %309, %278 : vector<8x32xi1>, vector<8x32xf32>
    %319 = vector.shape_cast %311 : vector<8x1xi1> to vector<8x1xi1>
    %320 = vector.broadcast %319 : vector<8x1xi1> to vector<8x32xi1>
    %321 = arith.select %320, %307, %281 : vector<8x32xi1>, vector<8x32xf32>
    %c4_i32_92 = arith.constant 4 : i32
    %322 = arith.muli %c1_i32_67, %c4_i32_92 : i32
    %c3_i32_93 = arith.constant 3 : i32
    %323 = arith.addi %322, %c3_i32_93 : i32
    %324 = arith.index_cast %323 : i32 to index
    %c0_94 = arith.constant 0 : index
    %c0_95 = arith.constant 0 : index
    %325 = vector.load %arg16[%324, %c0_94, %c0_95] : memref<8x8x128xf32, #tpu.memory_space<vmem>>, vector<1x8x128xf32>
    %326 = vector.shape_cast %325 : vector<1x8x128xf32> to vector<8x128xf32>
    %cst_96 = arith.constant dense<0.000000e+00> : vector<8x128xf32>
    %327 = tpu.matmul %318, %34, %cst_96 {dimension_numbers = #tpu.dot_dimension_numbers<[1], [0], [0], [1], [0, 0, 1, 1], [], []>} : vector<8x32xf32>, vector<32x128xf32>, vector<8x128xf32> -> vector<8x128xf32>
    %328 = arith.addf %326, %327 : vector<8x128xf32>
    %329 = vector.extract_strided_slice %328 {offsets = [0, 0], sizes = [8, 64], strides = [1, 1]} : vector<8x128xf32> to vector<8x64xf32>
    %330 = arith.negf %329 : vector<8x64xf32>
    %331 = math.exp %330 : vector<8x64xf32>
    %cst_97 = arith.constant 1.000000e+00 : f32
    %332 = vector.broadcast %cst_97 : f32 to vector<8x64xf32>
    %333 = arith.addf %332, %331 : vector<8x64xf32>
    %334 = arith.divf %332, %333 : vector<8x64xf32>
    %335 = vector.extract_strided_slice %328 {offsets = [0, 64], sizes = [8, 32], strides = [1, 1]} : vector<8x128xf32> to vector<8x32xf32>
    %336 = math.tanh %335 : vector<8x32xf32>
    %337 = vector.extract_strided_slice %328 {offsets = [0, 96], sizes = [8, 32], strides = [1, 1]} : vector<8x128xf32> to vector<8x32xf32>
    %338 = arith.negf %337 : vector<8x32xf32>
    %339 = math.exp %338 : vector<8x32xf32>
    %cst_98 = arith.constant 1.000000e+00 : f32
    %340 = vector.broadcast %cst_98 : f32 to vector<8x32xf32>
    %341 = arith.addf %340, %339 : vector<8x32xf32>
    %342 = arith.divf %340, %341 : vector<8x32xf32>
    %343 = vector.extract_strided_slice %334 {offsets = [0, 32], sizes = [8, 32], strides = [1, 1]} : vector<8x64xf32> to vector<8x32xf32>
    %344 = arith.mulf %343, %321 : vector<8x32xf32>
    %345 = vector.extract_strided_slice %334 {offsets = [0, 0], sizes = [8, 32], strides = [1, 1]} : vector<8x64xf32> to vector<8x32xf32>
    %346 = arith.mulf %345, %336 : vector<8x32xf32>
    %347 = arith.addf %344, %346 : vector<8x32xf32>
    %348 = math.tanh %347 : vector<8x32xf32>
    %349 = arith.mulf %342, %348 : vector<8x32xf32>
    %350 = vector.broadcast %323 : i32 to vector<8x1xi32>
    %351 = arith.cmpi slt, %350, %33 : vector<8x1xi32>
    %cst_99 = arith.constant 0.000000e+00 : f32
    %352 = vector.shape_cast %351 : vector<8x1xi1> to vector<8x1xi1>
    %353 = vector.broadcast %352 : vector<8x1xi1> to vector<8x32xi1>
    %354 = vector.broadcast %cst_99 : f32 to vector<8x32xf32>
    %355 = arith.select %353, %349, %354 : vector<8x32xi1>, vector<8x32xf32>
    %356 = vector.shape_cast %351 : vector<8x1xi1> to vector<8x1xi1>
    %357 = vector.broadcast %356 : vector<8x1xi1> to vector<8x32xi1>
    %358 = arith.select %357, %349, %318 : vector<8x32xi1>, vector<8x32xf32>
    %359 = vector.shape_cast %351 : vector<8x1xi1> to vector<8x1xi1>
    %360 = vector.broadcast %359 : vector<8x1xi1> to vector<8x32xi1>
    %361 = arith.select %360, %347, %321 : vector<8x32xi1>, vector<8x32xf32>
    %c128_i32_100 = arith.constant 128 : i32
    %362 = arith.muli %c1_i32_67, %c128_i32_100 : i32
    %363 = tpu.assume_multiple %362, 128 : i32
    %364 = tpu.concatenate %235, %275, %315, %355 in 1 : vector<8x32xf32>, vector<8x32xf32>, vector<8x32xf32>, vector<8x32xf32> -> vector<8x128xf32>
    %c0_101 = arith.constant 0 : index
    %365 = arith.index_cast %363 : i32 to index
    %366 = vector.load %arg13[%c0_101, %365] : memref<8x256xf32, #tpu.memory_space<vmem>>, vector<8x128xf32>
    tpu.vector_store %arg13[%c0_101, %365], %364 {strides = array<i32>} : memref<8x256xf32, #tpu.memory_space<vmem>>, vector<8x128xf32>,
    %c2_i32_102 = arith.constant 2 : i32
    %c0_103 = arith.constant 0 : index
    %c0_104 = arith.constant 0 : index
    %367 = vector.load %arg14[%c0_103, %c0_104] : memref<8x32xf32, #tpu.memory_space<vmem>>, vector<8x32xf32>
    tpu.vector_store %arg14[%c0_103, %c0_104], %358 {strides = array<i32>} : memref<8x32xf32, #tpu.memory_space<vmem>>, vector<8x32xf32>,
    %c0_105 = arith.constant 0 : index
    %c0_106 = arith.constant 0 : index
    %368 = vector.load %arg15[%c0_105, %c0_106] : memref<8x32xf32, #tpu.memory_space<vmem>>, vector<8x32xf32>
    tpu.vector_store %arg15[%c0_105, %c0_106], %361 {strides = array<i32>} : memref<8x32xf32, #tpu.memory_space<vmem>>, vector<8x32xf32>,
    return
  }
}

</mosaic_0001>

<bundles_post_ra>
// kernel: tile.13
= control target key start
LH: loop header
LB: loop body
LE: loop exit
PB: predicated region body
PF: predicated region fallthrough
CT: control target
= control target key end

     0   :  { %s28_s0 = inlined_call_operand.vmem [shape: f32[8], index: 0, kind: input, shape index: {}]   ;;  %s29_s1 = inlined_call_operand.vmem [shape: f32[16,8], index: 1, kind: output, shape index: {}]  }
   0x1   :  { %v4_v0 = vld [vmem:[%s28_s0] ss:$0 sm:$0xff] }
   0x2   :  { %5 = vst [vmem:[%s29_s1] sm:$0xff] %v4_v0  ;;  %8 = vst [vmem:[%s29_s1 + $0x8] sm:$0xff] %v4_v0 }

// kernel: tile.14
= control target key start
LH: loop header
LB: loop body
LE: loop exit
PB: predicated region body
PF: predicated region fallthrough
CT: control target
= control target key end

     0   :  { %s131_s10 = smov 120   ;;  %s132_s11 = smov 104   ;;  %vm3_vm0 = vcmask 64512   ;;  %vm9_vm1 = vcmask 1048512   ;;  %vm15_vm2 = vcmask 982912   ;;  %vm21_vm3 = vcmask 917312   ;;  %s207_s0 = inlined_call_operand.vmem [shape: f32[16,8], index: 0, kind: input, shape index: {}]   ;;  %s208_s1 = inlined_call_operand.vmem [shape: f32[1,128], index: 1, kind: output, shape index: {}]  }
   0x1   :  { %v101_v0 = vld [vmem:[%s207_s0 + $0xf] sm:$0x1]   ;;  %v103_v1 = vld [vmem:[%s207_s0 + $0xd] sm:$0x1]   ;;  %v102_v2 = vld [vmem:[%s207_s0 + $0xe] sm:$0x1]  }
   0x2   :  { %7 = vrot.lane.b32.xlu0 %v101_v0, %s131_s10  ;;  %19 = vrot.lane.b32.xlu1 %v103_v1, %s132_s11  ;;  %v104_v3 = vld [vmem:[%s207_s0 + $0xc] sm:$0x1]   ;;  %s133_s16 = smov 112   ;;  %s134_s17 = smov 96   ;;  %v105_v4 = vld [vmem:[%s207_s0 + $0xb] sm:$0x1]  }
   0x3   :  { %v106_v5 = vld [vmem:[%s207_s0 + $0xa] sm:$0x1]   ;;  %v2_v6 = vld [vmem:[%s207_s0] sm:$0x1]   ;;  %s135_s24 = smov 88   ;;  %s136_s25 = smov 80  }
   0x4   :  { %4 = vst.msk [vmem:[#allocation0] sm:$0x1] %vm3_vm0, %v2_v6   ;;  %v107_v7 = vld [vmem:[%s207_s0 + $0x9] sm:$0x1]   ;;  %v108_v8 = vld [vmem:[%s207_s0 + $0x8] sm:$0x1]  }
   0x5   :  { %s137_s30 = smov 72   ;;  %s138_s2 = smov 64   ;;  %v109_v9 = vld [vmem:[%s207_s0 + $0x7] sm:$0x1]   ;;  %v110_v10 = vld [vmem:[%s207_s0 + $0x6] sm:$0x1]  }
   0x6   :  { %13 = vrot.lane.b32.xlu0 %v102_v2, %s133_s16  ;;  %25 = vrot.lane.b32.xlu1 %v104_v3, %s134_s17  ;;  %s139_s7 = smov 56   ;;  %s140_s8 = smov 48   ;;  %v111_v11 = vld [vmem:[%s207_s0 + $0x5] sm:$0x1]   ;;  %v112_v12 = vld [vmem:[%s207_s0 + $0x4] sm:$0x1]  }
   0x7   :  { %s141_s13 = smov 40   ;;  %s142_s14 = smov 32   ;;  %v113_v13 = vld [vmem:[%s207_s0 + $0x3] sm:$0x1]   ;;  %v114_v14 = vld [vmem:[%s207_s0 + $0x2] sm:$0x1]  }
   0x8   :  { %s143_s19 = smov 24   ;;  %s144_s20 = smov 16   ;;  %v115_v15 = vld [vmem:[%s207_s0 + $0x1] sm:$0x1]   ;;  %vm27_vm4 = vcmask 851712   ;;  %vm33_vm5 = vcmask 786112  }
   0x9   :  { %s145_s0 = smov 8   ;;  %vm39_vm6 = vcmask 720512   ;;  %vm45_vm7 = vcmask 654912   ;;  %vm51_vm8 = vcmask 589312   ;;  %vm57_vm9 = vcmask 523712  }
   0xa   :  { %31 = vrot.lane.b32.xlu0 %v105_v4, %s135_s24  ;;  %37 = vrot.lane.b32.xlu1 %v106_v5, %s136_s25  ;;  %vm63_vm10 = vcmask 458112   ;;  %vm69_vm11 = vcmask 392512   ;;  %vm75_vm12 = vcmask 326912   ;;  %vm81_vm13 = vcmask 261312  }
   0xb   :  { %vm87_vm14 = vcmask 195712   ;;  %vm93_vm15 = vcmask 130112  }
   0xe   :  { %43 = vrot.lane.b32.xlu0 %v107_v7, %s137_s30  ;;  %49 = vrot.lane.b32.xlu1 %v108_v8, %s138_s2 }
  0x12   :  { %55 = vrot.lane.b32.xlu0 %v109_v9, %s139_s7  ;;  %61 = vrot.lane.b32.xlu1 %v110_v10, %s140_s8 }
  0x16   :  { %67 = vrot.lane.b32.xlu0 %v111_v11, %s141_s13  ;;  %73 = vrot.lane.b32.xlu1 %v112_v12, %s142_s14 }
  0x1a   :  { %79 = vrot.lane.b32.xlu0 %v113_v13, %s143_s19  ;;  %85 = vrot.lane.b32.xlu1 %v114_v14, %s144_s20 }
  0x1e   :  { %91 = vrot.lane.b32.xlu0 %v115_v15, %s145_s0 }
  0x74   :  { %v8_v16 = vpop.permute.xlu0 %7   ;;  %v20_v17 = vpop.permute.xlu1 %19  }
  0x75   :  { %10 = vst.msk [vmem:[#allocation0] sm:$0x1] %vm9_vm1, %v8_v16  }
  0x78   :  { %v14_v18 = vpop.permute.xlu0 %13   ;;  %v26_v19 = vpop.permute.xlu1 %25  }
  0x79   :  { %16 = vst.msk [vmem:[#allocation0] sm:$0x1] %vm15_vm2, %v14_v18  }
  0x7a   :  { %22 = vst.msk [vmem:[#allocation0] sm:$0x1] %vm21_vm3, %v20_v17  }
  0x7b   :  { %28 = vst.msk [vmem:[#allocation0] sm:$0x1] %vm27_vm4, %v26_v19  }
  0x7c   :  { %v32_v20 = vpop.permute.xlu0 %31   ;;  %v38_v21 = vpop.permute.xlu1 %37  }
  0x7d   :  { %34 = vst.msk [vmem:[#allocation0] sm:$0x1] %vm33_vm5, %v32_v20  }
  0x7e   :  { %40 = vst.msk [vmem:[#allocation0] sm:$0x1] %vm39_vm6, %v38_v21  }
  0x80   :  { %v44_v22 = vpop.permute.xlu0 %43   ;;  %v50_v23 = vpop.permute.xlu1 %49  }
  0x81   :  { %46 = vst.msk [vmem:[#allocation0] sm:$0x1] %vm45_vm7, %v44_v22  }
  0x82   :  { %52 = vst.msk [vmem:[#allocation0] sm:$0x1] %vm51_vm8, %v50_v23  }
  0x84   :  { %v56_v24 = vpop.permute.xlu0 %55   ;;  %v62_v25 = vpop.permute.xlu1 %61  }
  0x85   :  { %58 = vst.msk [vmem:[#allocation0] sm:$0x1] %vm57_vm9, %v56_v24  }
  0x86   :  { %64 = vst.msk [vmem:[#allocation0] sm:$0x1] %vm63_vm10, %v62_v25  }
  0x88   :  { %v68_v26 = vpop.permute.xlu0 %67   ;;  %v74_v27 = vpop.permute.xlu1 %73  }
  0x89   :  { %70 = vst.msk [vmem:[#allocation0] sm:$0x1] %vm69_vm11, %v68_v26  }
  0x8a   :  { %76 = vst.msk [vmem:[#allocation0] sm:$0x1] %vm75_vm12, %v74_v27  }
  0x8c   :  { %v80_v28 = vpop.permute.xlu0 %79   ;;  %v86_v29 = vpop.permute.xlu1 %85  }
  0x8d   :  { %82 = vst.msk [vmem:[#allocation0] sm:$0x1] %vm81_vm13, %v80_v28  }
  0x8e   :  { %88 = vst.msk [vmem:[#allocation0] sm:$0x1] %vm87_vm14, %v86_v29  }
  0x90   :  { %v92_v30 = vpop.permute.xlu0 %91  }
  0x91   :  { %94 = vst.msk [vmem:[#allocation0] sm:$0x1] %vm93_vm15, %v92_v30  }
  0x98   :  { %v98_v31 = vld [vmem:[#allocation0] sm:$0x1] }
  0x99   :  { %100 = vst [vmem:[%s208_s1] sm:$0x1] %v98_v31 }

// kernel: full_model_both_forward.2
= control target key start
LH: loop header
LB: loop body
LE: loop exit
PB: predicated region body
PF: predicated region fallthrough
CT: control target
= control target key end

     0   :  { %vm18_vm0 = vcmask 516096   ;;  %v1609_v1 = vmov 0.0   ;;  %vm83_vm1 = vcmask 523264   ;;  %s1966_s1 = inlined_call_operand.vmem [shape: bf16[3,64,128], index: 1, kind: input, shape index: {}]   ;;  %s1967_s0 = inlined_call_operand.vmem [shape: f32[16,16,64], index: 0, kind: input, shape index: {}]   ;;  %s1968_s3 = inlined_call_operand.vmem [shape: f32[16,256], index: 3, kind: input, shape index: {}]   ;;  %s1969_s2 = inlined_call_operand.vmem [shape: f32[1,128], index: 2, kind: input, shape index: {}]   ;;  %s1970_s4 = inlined_call_operand.vmem [shape: f32[16,128], index: 4, kind: output, shape index: {}]  }
   0x1   :  { %v1597_v0 = vld [vmem:[%s1966_s1 + $0x20] sm:$0xff]   ;;  %19 = vst.msk [vmem:[#allocation2] sm:$0x1] %vm18_vm0, %v1609_v1  ;;  %20 = vst.msk [vmem:[#allocation2 + $0x18] sm:$0x1] %vm18_vm0, %v1609_v1  ;;  %v1598_v2 = vld [vmem:[%s1966_s1 + $0x28] sm:$0xff]  }
   0x2   :  { %21 = vst.msk [vmem:[#allocation2 + $0x30] sm:$0x1] %vm18_vm0, %v1609_v1  ;;  %22 = vst.msk [vmem:[#allocation2 + $0x48] sm:$0x1] %vm18_vm0, %v1609_v1  ;;  %1348 = vmatprep.subr.bf16.mxu0 %v1597_v0  ;;  %1500 = vmatprep.subr.bf16.mxu1 %v1597_v0  ;;  %v1599_v3 = vld [vmem:[%s1966_s1 + $0x30] sm:$0xff]   ;;  %v51_v4 = vld [vmem:[%s1967_s0] sm:$0xff] }
   0x3   :  { %23 = vst.msk [vmem:[#allocation2 + $0x60] sm:$0x1] %vm18_vm0, %v1609_v1  ;;  %24 = vst.msk [vmem:[#allocation2 + $0x78] sm:$0x1] %vm18_vm0, %v1609_v1  ;;  %1349 = vmatpush3.bf16.msra.mxu0 %v1597_v0  ;;  %1504 = vmatpush3.bf16.msra.mxu1 %v1597_v0  ;;  %v52_v5 = vld [vmem:[%s1967_s0 + $0x8] sm:$0xff]  ;;  %v59_v6 = vld [vmem:[%s1967_s0 + $0x40] sm:$0xff] }
   0x4   :  { %25 = vst.msk [vmem:[#allocation2 + $0x90] sm:$0x1] %vm18_vm0, %v1609_v1  ;;  %26 = vst.msk [vmem:[#allocation2 + $0xa8] sm:$0x1] %vm18_vm0, %v1609_v1  ;;  %1350 = vmatprep.subr.bf16.mxu0 %v1598_v2  ;;  %1501 = vmatprep.subr.bf16.mxu1 %v1598_v2  ;;  %v60_v7 = vld [vmem:[%s1967_s0 + $0x48] sm:$0xff]  ;;  %v53_v8 = vld [vmem:[%s1967_s0 + $0x10] sm:$0xff] }
   0x5   :  { %27 = vst.msk [vmem:[#allocation2 + $0xc0] sm:$0x1] %vm18_vm0, %v1609_v1  ;;  %28 = vst.msk [vmem:[#allocation2 + $0xd8] sm:$0x1] %vm18_vm0, %v1609_v1  ;;  %v54_v9 = vld [vmem:[%s1967_s0 + $0x18] sm:$0xff]  ;;  %v61_v10 = vld [vmem:[%s1967_s0 + $0x50] sm:$0xff] }
   0x6   :  { %29 = vst.msk [vmem:[#allocation2 + $0xf0] sm:$0x1] %vm18_vm0, %v1609_v1  ;;  %30 = vst.msk [vmem:[#allocation2 + $0x108] sm:$0x1] %vm18_vm0, %v1609_v1  ;;  %v62_v11 = vld [vmem:[%s1967_s0 + $0x58] sm:$0xff]  ;;  %v55_v13 = vld [vmem:[%s1967_s0 + $0x20] sm:$0xff] }
   0x7   :  { %31 = vst.msk [vmem:[#allocation2 + $0x120] sm:$0x1] %vm18_vm0, %v1609_v1  ;;  %32 = vst.msk [vmem:[#allocation2 + $0x138] sm:$0x1] %vm18_vm0, %v1609_v1  ;;  %1351 = vmatpush3.bf16.msra.mxu0 %v1598_v2  ;;  %1505 = vmatpush3.bf16.msra.mxu1 %v1598_v2  ;;  %v1600_v12 = vld [vmem:[%s1966_s1 + $0x38] sm:$0xff]   ;;  %v56_v14 = vld [vmem:[%s1967_s0 + $0x28] sm:$0xff] }
   0x8   :  { %33 = vst.msk [vmem:[#allocation2 + $0x150] sm:$0x1] %vm18_vm0, %v1609_v1  ;;  %34 = vst.msk [vmem:[#allocation2 + $0x168] sm:$0x1] %vm18_vm0, %v1609_v1  ;;  %1352 = vmatprep.subr.bf16.mxu0 %v1599_v3  ;;  %1502 = vmatprep.subr.bf16.mxu1 %v1599_v3  ;;  %v63_v15 = vld [vmem:[%s1967_s0 + $0x60] sm:$0xff]  ;;  %v64_v16 = vld [vmem:[%s1967_s0 + $0x68] sm:$0xff] }
   0x9   :  { %35 = vst.msk [vmem:[#allocation2 + $0x11] sm:$0x1] %vm18_vm0, %v1609_v1  ;;  %36 = vst.msk [vmem:[#allocation2 + $0x29] sm:$0x1] %vm18_vm0, %v1609_v1  ;;  %v57_v17 = vld [vmem:[%s1967_s0 + $0x30] sm:$0xff]  ;;  %v58_v18 = vld [vmem:[%s1967_s0 + $0x38] sm:$0xff] }
   0xa   :  { %37 = vst.msk [vmem:[#allocation2 + $0x41] sm:$0x1] %vm18_vm0, %v1609_v1  ;;  %38 = vst.msk [vmem:[#allocation2 + $0x59] sm:$0x1] %vm18_vm0, %v1609_v1  ;;  %v65_v19 = vld [vmem:[%s1967_s0 + $0x70] sm:$0xff]  ;;  %v1601_v20 = vld [vmem:[%s1966_s1] sm:$0xff]  }
   0xb   :  { %39 = vst.msk [vmem:[#allocation2 + $0x71] sm:$0x1] %vm18_vm0, %v1609_v1  ;;  %40 = vst.msk [vmem:[#allocation2 + $0x89] sm:$0x1] %vm18_vm0, %v1609_v1  ;;  %1353 = vmatpush3.bf16.msra.mxu0 %v1599_v3  ;;  %1506 = vmatpush3.bf16.msra.mxu1 %v1599_v3  ;;  %v66_v21 = vld [vmem:[%s1967_s0 + $0x78] sm:$0xff]  ;;  %v1602_v34 = vld [vmem:[%s1966_s1 + $0x8] sm:$0xff]  }
   0xc   :  { %41 = vst.msk [vmem:[#allocation2 + $0xa1] sm:$0x1] %vm18_vm0, %v1609_v1  ;;  %42 = vst.msk [vmem:[#allocation2 + $0xb9] sm:$0x1] %vm18_vm0, %v1609_v1  ;;  %1354 = vmatprep.subr.bf16.mxu0 %v1600_v12  ;;  %1503 = vmatprep.subr.bf16.mxu1 %v1600_v12  ;;  %v67_v36 = vld [vmem:[%s1967_s0 + $0x80] sm:$0xff]  ;;  %v68_v37 = vld [vmem:[%s1967_s0 + $0x88] sm:$0xff] }
   0xd   :  { %43 = vst.msk [vmem:[#allocation2 + $0xd1] sm:$0x1] %vm18_vm0, %v1609_v1  ;;  %44 = vst.msk [vmem:[#allocation2 + $0xe9] sm:$0x1] %vm18_vm0, %v1609_v1  ;;  %v1603_v44 = vld [vmem:[%s1966_s1 + $0x10] sm:$0xff]   ;;  %v70_v50 = vld [vmem:[%s1967_s0 + $0x98] sm:$0xff] }
   0xe   :  { %45 = vst.msk [vmem:[#allocation2 + $0x101] sm:$0x1] %vm18_vm0, %v1609_v1  ;;  %46 = vst.msk [vmem:[#allocation2 + $0x119] sm:$0x1] %vm18_vm0, %v1609_v1  ;;  %v69_v49 = vld [vmem:[%s1967_s0 + $0x90] sm:$0xff]  ;;  %v71_v54 = vld [vmem:[%s1967_s0 + $0xa0] sm:$0xff] }
   0xf   :  { %47 = vst.msk [vmem:[#allocation2 + $0x131] sm:$0x1] %vm18_vm0, %v1609_v1  ;;  %48 = vst.msk [vmem:[#allocation2 + $0x149] sm:$0x1] %vm18_vm0, %v1609_v1  ;;  %1355 = vmatpush3.bf16.msra.mxu0 %v1600_v12  ;;  %1507 = vmatpush3.bf16.msra.mxu1 %v1600_v12  ;;  %v72_v55 = vld [vmem:[%s1967_s0 + $0xa8] sm:$0xff]  ;;  %v1604_v56 = vld [vmem:[%s1966_s1 + $0x18] sm:$0xff]  }
  0x10   :  { %49 = vst.msk [vmem:[#allocation2 + $0x161] sm:$0x1] %vm18_vm0, %v1609_v1  ;;  %50 = vst.msk [vmem:[#allocation2 + $0x179] sm:$0x1] %vm18_vm0, %v1609_v1  ;;  %1388 = vmatprep.subr.bf16.mxu0 %v1601_v20  ;;  %1508 = vmatprep.subr.bf16.mxu1 %v1601_v20  ;;  %v73_v62 = vld [vmem:[%s1967_s0 + $0xb0] sm:$0xff]  ;;  %v74_v63 = vld [vmem:[%s1967_s0 + $0xb8] sm:$0xff] }
  0x11   :  { %84 = vst.msk [vmem:[#allocation2 + $0x1] sm:$0xff] %vm83_vm1, %v51_v4  ;;  %85 = vst.msk [vmem:[#allocation2 + $0x9] sm:$0xff] %vm83_vm1, %v52_v5  ;;  %v1605_v1 = vld [vmem:[%s1966_s1 + $0x40] sm:$0xff]  }
  0x12   :  { %92 = vst.msk [vmem:[#allocation2 + $0x61] sm:$0xff] %vm83_vm1, %v59_v6  ;;  %93 = vst.msk [vmem:[#allocation2 + $0x69] sm:$0xff] %vm83_vm1, %v60_v7  ;;  %v75_v6 = vld [vmem:[%s1967_s0 + $0xc0] sm:$0xff]  ;;  %v76_v7 = vld [vmem:[%s1967_s0 + $0xc8] sm:$0xff] }
  0x13   :  { %86 = vst.msk [vmem:[#allocation2 + $0x19] sm:$0xff] %vm83_vm1, %v53_v8  ;;  %87 = vst.msk [vmem:[#allocation2 + $0x21] sm:$0xff] %vm83_vm1, %v54_v9 }
  0x14   :  { %94 = vst.msk [vmem:[#allocation2 + $0x79] sm:$0xff] %vm83_vm1, %v61_v10  ;;  %95 = vst.msk [vmem:[#allocation2 + $0x81] sm:$0xff] %vm83_vm1, %v62_v11  ;;  %v77_v10 = vld [vmem:[%s1967_s0 + $0xd0] sm:$0xff] }
  0x15   :  { %88 = vst.msk [vmem:[#allocation2 + $0x31] sm:$0xff] %vm83_vm1, %v55_v13  ;;  %89 = vst.msk [vmem:[#allocation2 + $0x39] sm:$0xff] %vm83_vm1, %v56_v14  ;;  %v78_v13 = vld [vmem:[%s1967_s0 + $0xd8] sm:$0xff]  ;;  %v1606_v14 = vld [vmem:[%s1966_s1 + $0x48] sm:$0xff]  }
  0x16   :  { %96 = vst.msk [vmem:[#allocation2 + $0x91] sm:$0xff] %vm83_vm1, %v63_v15  ;;  %97 = vst.msk [vmem:[#allocation2 + $0x99] sm:$0xff] %vm83_vm1, %v64_v16 }
  0x17   :  { %90 = vst.msk [vmem:[#allocation2 + $0x49] sm:$0xff] %vm83_vm1, %v57_v17  ;;  %91 = vst.msk [vmem:[#allocation2 + $0x51] sm:$0xff] %vm83_vm1, %v58_v18  ;;  %v79_v17 = vld [vmem:[%s1967_s0 + $0xe0] sm:$0xff]  ;;  %v80_v18 = vld [vmem:[%s1967_s0 + $0xe8] sm:$0xff] }
  0x18   :  { %98 = vst.msk [vmem:[#allocation2 + $0xa9] sm:$0xff] %vm83_vm1, %v65_v19  ;;  %v172_v22 = vld [vmem:[#allocation2 + $0x1] sm:$0xff]  ;;  %v173_v23 = vld [vmem:[#allocation2 + $0x9] sm:$0xff]  ;;  %99 = vst.msk [vmem:[#allocation2 + $0xb1] sm:$0xff] %vm83_vm1, %v66_v21 }
  0x19   :  { %v180_v24 = vld [vmem:[#allocation2 + $0x61] sm:$0xff]  ;;  %v204_v25 = vpack.c.bf16 %v173_v23, %v172_v22  ;;  %v181_v26 = vld [vmem:[#allocation2 + $0x69] sm:$0xff]  ;;  %100 = vst.msk [vmem:[#allocation2 + $0xc1] sm:$0xff] %vm83_vm1, %v67_v36  ;;  %101 = vst.msk [vmem:[#allocation2 + $0xc9] sm:$0xff] %vm83_vm1, %v68_v37 }
  0x1a   :  { %v174_v27 = vld [vmem:[#allocation2 + $0x19] sm:$0xff]  ;;  %v175_v28 = vld [vmem:[#allocation2 + $0x21] sm:$0xff]  ;;  %v208_v29 = vpack.c.bf16 %v181_v26, %v180_v24  ;;  %102 = vst.msk [vmem:[#allocation2 + $0xd9] sm:$0xff] %vm83_vm1, %v69_v49  ;;  %103 = vst.msk [vmem:[#allocation2 + $0xe1] sm:$0xff] %vm83_vm1, %v70_v50 }
  0x1b   :  { %v205_v30 = vpack.c.bf16 %v175_v28, %v174_v27  ;;  %v182_v31 = vld [vmem:[#allocation2 + $0x79] sm:$0xff]  ;;  %v183_v32 = vld [vmem:[#allocation2 + $0x81] sm:$0xff]  ;;  %1356 = vmatprep.mubr.msk.bf16.mxu0 %vm83_vm1, %v204_v25  ;;  %104 = vst.msk [vmem:[#allocation2 + $0xf1] sm:$0xff] %vm83_vm1, %v71_v54  ;;  %105 = vst.msk [vmem:[#allocation2 + $0xf9] sm:$0xff] %vm83_vm1, %v72_v55 }
  0x1c   :  { %v209_v33 = vpack.c.bf16 %v183_v32, %v182_v31  ;;  %1364 = vmatprep.mubr.msk.bf16.mxu1 %vm83_vm1, %v208_v29  ;;  %v176_v35 = vld [vmem:[#allocation2 + $0x31] sm:$0xff]  ;;  %v177_v38 = vld [vmem:[#allocation2 + $0x39] sm:$0xff]  ;;  %v117_v51 = vld [vmem:[#allocation2 + $0x8] sm:$0xff]  ;;  %106 = vst.msk [vmem:[#allocation2 + $0x109] sm:$0xff] %vm83_vm1, %v73_v62 }
  0x1d   :  { %v184_v39 = vld [vmem:[#allocation2 + $0x91] sm:$0xff]  ;;  %v185_v40 = vld [vmem:[#allocation2 + $0x99] sm:$0xff]  ;;  %1357 = vmatmul.mubr.msk.bf16.vlgmr.msra.gmra.mrb[0].mxu0 %vm83_vm1, %v205_v30  ;;  %v206_v41 = vpack.c.bf16 %v177_v38, %v176_v35  ;;  %107 = vst.msk [vmem:[#allocation2 + $0x111] sm:$0xff] %vm83_vm1, %v74_v63  ;;  %108 = vst.msk [vmem:[#allocation2 + $0x121] sm:$0xff] %vm83_vm1, %v75_v6 }
  0x1e   :  { %1365 = vmatmul.mubr.msk.bf16.vlgmr.msra.gmra.mrb[0].mxu1 %vm83_vm1, %v209_v33  ;;  %v210_v42 = vpack.c.bf16 %v185_v40, %v184_v39  ;;  %v178_v43 = vld [vmem:[#allocation2 + $0x49] sm:$0xff]  ;;  %1389 = vmatpush3.bf16.msra.mxu0 %v1601_v20  ;;  %v179_v45 = vld [vmem:[#allocation2 + $0x51] sm:$0xff]  ;;  %v116_v48 = vld [vmem:[#allocation2] sm:$0xff]  ;;  %109 = vst.msk [vmem:[#allocation2 + $0x129] sm:$0xff] %vm83_vm1, %v76_v7 }
  0x1f   :  { %v186_v46 = vld [vmem:[#allocation2 + $0xa9] sm:$0xff]  ;;  %v187_v47 = vld [vmem:[#allocation2 + $0xb1] sm:$0xff]  ;;  %1512 = vmatpush3.bf16.msra.mxu1 %v1601_v20  ;;  %1390 = vmatprep.subr.bf16.mxu0 %v1602_v34  ;;  %v207_v52 = vpack.c.bf16 %v179_v45, %v178_v43  ;;  %v148_v59 = vpack.c.bf16 %v117_v51, %v116_v48  ;;  %v119_v0 = vld [vmem:[#allocation2 + $0x20] sm:$0xff]  ;;  %110 = vst.msk [vmem:[#allocation2 + $0x139] sm:$0xff] %vm83_vm1, %v77_v10 }
  0x20   :  { %1360 = vmatprep.mubr.msk.bf16.mxu0 %vm83_vm1, %v206_v41  ;;  %1368 = vmatprep.mubr.msk.bf16.mxu1 %vm83_vm1, %v210_v42  ;;  %v211_v53 = vpack.c.bf16 %v187_v47, %v186_v46  ;;  %v188_v57 = vld [vmem:[#allocation2 + $0xc1] sm:$0xff]  ;;  %v189_v58 = vld [vmem:[#allocation2 + $0xc9] sm:$0xff]  ;;  %v118_v61 = vld [vmem:[#allocation2 + $0x18] sm:$0xff]  ;;  %111 = vst.msk [vmem:[#allocation2 + $0x141] sm:$0xff] %vm83_vm1, %v78_v13 }
  0x21   :  { %1509 = vmatprep.subr.bf16.mxu1 %v1602_v34  ;;  %v212_v60 = vpack.c.bf16 %v189_v58, %v188_v57  ;;  %v120_v2 = vld [vmem:[#allocation2 + $0x30] sm:$0xff]  ;;  %v190_v3 = vld [vmem:[#allocation2 + $0xd9] sm:$0xff]  ;;  %v191_v4 = vld [vmem:[#allocation2 + $0xe1] sm:$0xff]  ;;  %v149_v9 = vpack.c.bf16 %v119_v0, %v118_v61  ;;  %112 = vst.msk [vmem:[#allocation2 + $0x151] sm:$0xff] %vm83_vm1, %v79_v17 }
  0x22   :  { %1391 = vmatpush3.bf16.msra.mxu0 %v1602_v34  ;;  %v121_v5 = vld [vmem:[#allocation2 + $0x38] sm:$0xff]  ;;  %v213_v8 = vpack.c.bf16 %v191_v4, %v190_v3  ;;  %v122_v19 = vld [vmem:[#allocation2 + $0x48] sm:$0xff]  ;;  %v123_v20 = vld [vmem:[#allocation2 + $0x50] sm:$0xff]  ;;  %113 = vst.msk [vmem:[#allocation2 + $0x159] sm:$0xff] %vm83_vm1, %v80_v18 }
  0x23   :  { %1513 = vmatpush3.bf16.msra.mxu1 %v1602_v34  ;;  %1392 = vmatprep.subr.bf16.mxu0 %v1603_v44  ;;  %v192_v11 = vld [vmem:[#allocation2 + $0xf1] sm:$0xff]  ;;  %v193_v12 = vld [vmem:[#allocation2 + $0xf9] sm:$0xff]  ;;  %v150_v16 = vpack.c.bf16 %v121_v5, %v120_v2  ;;  %v194_v22 = vld [vmem:[#allocation2 + $0x109] sm:$0xff]  ;;  %v151_v31 = vpack.c.bf16 %v123_v20, %v122_v19 }
  0x24   :  { %1510 = vmatprep.subr.bf16.mxu1 %v1603_v44  ;;  %v214_v15 = vpack.c.bf16 %v193_v12, %v192_v11  ;;  %v81_v21 = vld [vmem:[%s1967_s0 + $0xf0] sm:$0xff]  ;;  %v82_v24 = vld [vmem:[%s1967_s0 + $0xf8] sm:$0xff]  ;;  %v695_v26 = vld [vmem:[#allocation2 + $0x2] sm:$0xff] }
  0x25   :  { %1361 = vmatmul.mubr.msk.bf16.gmra.mrb[4].mxu0 %vm83_vm1, %v207_v52  ;;  %v195_v23 = vld [vmem:[#allocation2 + $0x111] sm:$0xff]  ;;  %114 = vst.msk [vmem:[#allocation2 + $0x169] sm:$0xff] %vm83_vm1, %v81_v21  ;;  %115 = vst.msk [vmem:[#allocation2 + $0x171] sm:$0xff] %vm83_vm1, %v82_v24  ;;  %v196_v27 = vld [vmem:[#allocation2 + $0x121] sm:$0xff] }
  0x26   :  { %1369 = vmatmul.mubr.msk.bf16.gmra.mrb[4].mxu1 %vm83_vm1, %v211_v53  ;;  %1393 = vmatpush3.bf16.msra.mxu0 %v1603_v44  ;;  %v1607_v25 = vld [vmem:[%s1966_s1 + $0x50] sm:$0xff]   ;;  %v215_v30 = vpack.c.bf16 %v195_v23, %v194_v22  ;;  %v1608_v33 = vld [vmem:[%s1966_s1 + $0x58] sm:$0xff]   ;;  %v698_v36 = vld [vmem:[#allocation2 + $0x22] sm:$0xff] }
  0x27   :  { %1372 = vmatprep.mubr.msk.bf16.mxu1 %vm83_vm1, %v212_v60  ;;  %1394 = vmatprep.subr.bf16.mxu0 %v1604_v56  ;;  %v197_v28 = vld [vmem:[#allocation2 + $0x129] sm:$0xff]  ;;  %v697_v35 = vld [vmem:[#allocation2 + $0x1a] sm:$0xff]  ;;  %v699_v39 = vld [vmem:[#allocation2 + $0x32] sm:$0xff] }
  0x28   :  { %1396 = vmatprep.mubr.msk.bf16.mxu0 %vm83_vm1, %v148_v59  ;;  %1514 = vmatpush3.bf16.msra.mxu1 %v1603_v44  ;;  %v696_v29 = vld [vmem:[#allocation2 + $0xa] sm:$0xff]  ;;  %v216_v32 = vpack.c.bf16 %v197_v28, %v196_v27  ;;  %v198_v37 = vld [vmem:[#allocation2 + $0x139] sm:$0xff]  ;;  %v199_v38 = vld [vmem:[#allocation2 + $0x141] sm:$0xff]  ;;  %v728_v44 = vpack.c.bf16 %v698_v36, %v697_v35 }
  0x29   :  { %1511 = vmatprep.subr.bf16.mxu1 %v1604_v56  ;;  %v727_v34 = vpack.c.bf16 %v696_v29, %v695_v26  ;;  %v200_v40 = vld [vmem:[#allocation2 + $0x151] sm:$0xff]  ;;  %v201_v41 = vld [vmem:[#allocation2 + $0x159] sm:$0xff]  ;;  %v217_v43 = vpack.c.bf16 %v199_v38, %v198_v37  ;;  %v125_v52 = vld [vmem:[#allocation2 + $0x68] sm:$0xff] }
  0x2a   :  { %1395 = vmatpush3.bf16.msra.mxu0 %v1604_v56  ;;  %v700_v42 = vld [vmem:[#allocation2 + $0x3a] sm:$0xff]  ;;  %v218_v45 = vpack.c.bf16 %v201_v41, %v200_v40  ;;  %v701_v47 = vld [vmem:[#allocation2 + $0x4a] sm:$0xff]  ;;  %v702_v48 = vld [vmem:[#allocation2 + $0x52] sm:$0xff] }
  0x2b   :  { %1428 = vmatprep.subr.bf16.mxu0 %v1605_v1  ;;  %v729_v46 = vpack.c.bf16 %v700_v42, %v699_v39  ;;  %v124_v51 = vld [vmem:[#allocation2 + $0x60] sm:$0xff]  ;;  %v704_v54 = vld [vmem:[#allocation2 + $0x6a] sm:$0xff]  ;;  %v126_v59 = vld [vmem:[#allocation2 + $0x78] sm:$0xff] }
  0x2c   :  { %1515 = vmatpush3.bf16.msra.mxu1 %v1604_v56  ;;  %v202_v49 = vld [vmem:[#allocation2 + $0x169] sm:$0xff]  ;;  %v203_v50 = vld [vmem:[#allocation2 + $0x171] sm:$0xff]  ;;  %v730_v56 = vpack.c.bf16 %v702_v48, %v701_v47  ;;  %v152_v57 = vpack.c.bf16 %v125_v52, %v124_v51  ;;  %v127_v60 = vld [vmem:[#allocation2 + $0x80] sm:$0xff] }
  0x2d   :  { %1397 = vmatmul.mubr.msk.bf16.vlgmr.msra.gmra.mrb[0].mxu0 %vm83_vm1, %v149_v9  ;;  %v703_v53 = vld [vmem:[#allocation2 + $0x62] sm:$0xff]  ;;  %v219_v55 = vpack.c.bf16 %v203_v50, %v202_v49  ;;  %v705_v61 = vld [vmem:[#allocation2 + $0x7a] sm:$0xff]  ;;  %v128_v63 = vld [vmem:[#allocation2 + $0x90] sm:$0xff]  ;;  %v153_v3 = vpack.c.bf16 %v127_v60, %v126_v59 }
  0x2e   :  { %1373 = vmatmul.mubr.msk.bf16.gmra.mrb[8].mxu1 %vm83_vm1, %v213_v8  ;;  %1429 = vmatpush3.bf16.msra.mxu0 %v1605_v1  ;;  %v731_v58 = vpack.c.bf16 %v704_v54, %v703_v53  ;;  %v706_v62 = vld [vmem:[#allocation2 + $0x82] sm:$0xff]  ;;  %v129_v0 = vld [vmem:[#allocation2 + $0x98] sm:$0xff]  ;;  %v131_v8 = vld [vmem:[#allocation2 + $0xb0] sm:$0xff] }
  0x2f   :  { %1376 = vmatprep.mubr.msk.bf16.mxu1 %vm83_vm1, %v214_v15  ;;  %1430 = vmatprep.subr.bf16.mxu0 %v1606_v14  ;;  %v707_v1 = vld [vmem:[#allocation2 + $0x92] sm:$0xff]  ;;  %v708_v2 = vld [vmem:[#allocation2 + $0x9a] sm:$0xff]  ;;  %v732_v4 = vpack.c.bf16 %v706_v62, %v705_v61  ;;  %v154_v5 = vpack.c.bf16 %v129_v0, %v128_v63  ;;  %v130_v7 = vld [vmem:[#allocation2 + $0xa8] sm:$0xff] }
  0x30   :  { %1400 = vmatprep.mubr.msk.bf16.mxu0 %vm83_vm1, %v150_v16  ;;  %v733_v6 = vpack.c.bf16 %v708_v2, %v707_v1  ;;  %v709_v9 = vld [vmem:[#allocation2 + $0xaa] sm:$0xff]  ;;  %v710_v10 = vld [vmem:[#allocation2 + $0xb2] sm:$0xff]  ;;  %v132_v11 = vld [vmem:[#allocation2 + $0xc0] sm:$0xff]  ;;  %v155_v15 = vpack.c.bf16 %v131_v8, %v130_v7 }
  0x31   :  { %v133_v12 = vld [vmem:[#allocation2 + $0xc8] sm:$0xff]  ;;  %v734_v16 = vpack.c.bf16 %v710_v10, %v709_v9  ;;  %v134_v19 = vld [vmem:[#allocation2 + $0xd8] sm:$0xff]  ;;  %v135_v20 = vld [vmem:[#allocation2 + $0xe0] sm:$0xff] }
  0x32   :  { %1431 = vmatpush3.bf16.msra.mxu0 %v1606_v14  ;;  %v711_v13 = vld [vmem:[#allocation2 + $0xc2] sm:$0xff]  ;;  %v712_v14 = vld [vmem:[#allocation2 + $0xca] sm:$0xff]  ;;  %v156_v17 = vpack.c.bf16 %v133_v12, %v132_v11  ;;  %v713_v21 = vld [vmem:[#allocation2 + $0xda] sm:$0xff]  ;;  %v157_v27 = vpack.c.bf16 %v135_v20, %v134_v19 }
  0x33   :  { %1432 = vmatprep.subr.bf16.mxu0 %v1607_v25  ;;  %v735_v18 = vpack.c.bf16 %v712_v14, %v711_v13  ;;  %v714_v22 = vld [vmem:[#allocation2 + $0xe2] sm:$0xff]  ;;  %v136_v23 = vld [vmem:[#allocation2 + $0xf0] sm:$0xff]  ;;  %v137_v24 = vld [vmem:[#allocation2 + $0xf8] sm:$0xff] }
  0x34   :  { %v716_v26 = vld [vmem:[#allocation2 + $0xfa] sm:$0xff]  ;;  %v736_v28 = vpack.c.bf16 %v714_v22, %v713_v21  ;;  %v158_v29 = vpack.c.bf16 %v137_v24, %v136_v23  ;;  %v141_v36 = vld [vmem:[#allocation2 + $0x128] sm:$0xff]  ;;  %v144_v47 = vld [vmem:[#allocation2 + $0x150] sm:$0xff] }
  0x35   :  { %1401 = vmatmul.mubr.msk.bf16.gmra.mrb[4].mxu0 %vm83_vm1, %v151_v31  ;;  %v138_v31 = vld [vmem:[#allocation2 + $0x108] sm:$0xff]  ;;  %v140_v35 = vld [vmem:[#allocation2 + $0x120] sm:$0xff]  ;;  %v145_v48 = vld [vmem:[#allocation2 + $0x158] sm:$0xff] }
  0x36   :  { %1377 = vmatmul.mubr.msk.bf16.gmra.mrb[12].mxu1 %vm83_vm1, %v215_v30  ;;  %1433 = vmatpush3.bf16.msra.mxu0 %v1607_v25  ;;  %v715_v25 = vld [vmem:[#allocation2 + $0xf2] sm:$0xff]  ;;  %v719_v37 = vld [vmem:[#allocation2 + $0x122] sm:$0xff]  ;;  %v720_v38 = vld [vmem:[#allocation2 + $0x12a] sm:$0xff]  ;;  %v160_v41 = vpack.c.bf16 %v141_v36, %v140_v35  ;;  %v162_v53 = vpack.c.bf16 %v145_v48, %v144_v47 }
  0x37   :  { %1380 = vmatprep.mubr.msk.bf16.mxu1 %vm83_vm1, %v216_v32  ;;  %1434 = vmatprep.subr.bf16.mxu0 %v1608_v33  ;;  %v737_v30 = vpack.c.bf16 %v716_v26, %v715_v25  ;;  %v139_v32 = vld [vmem:[#allocation2 + $0x110] sm:$0xff]  ;;  %v739_v42 = vpack.c.bf16 %v720_v38, %v719_v37  ;;  %v724_v50 = vld [vmem:[#allocation2 + $0x15a] sm:$0xff]  ;;  %v1089_v61 = vld [vmem:[%s1968_s3 + $0x8] sm:$0xff] }
  0x38   :  { %1436 = vmatprep.mubr.msk.bf16.mxu0 %vm83_vm1, %v727_v34  ;;  %v718_v34 = vld [vmem:[#allocation2 + $0x112] sm:$0xff]  ;;  %v159_v39 = vpack.c.bf16 %v139_v32, %v138_v31  ;;  %v1888_v63 = vld [vmem:[%s1969_s2] ss:$0 sm:$0xff] }
  0x39   :  { %v723_v49 = vld [vmem:[#allocation2 + $0x152] sm:$0xff] }
  0x3a   :  { %1435 = vmatpush3.bf16.msra.mxu0 %v1608_v33  ;;  %v717_v33 = vld [vmem:[#allocation2 + $0x10a] sm:$0xff]  ;;  %v741_v54 = vpack.c.bf16 %v724_v50, %v723_v49  ;;  %v1091_v62 = vld [vmem:[%s1968_s3 + $0x18] sm:$0xff] }
  0x3b   :  { %v738_v40 = vpack.c.bf16 %v718_v34, %v717_v33 }
  0x3d   :  { %1437 = vmatmul.mubr.msk.bf16.vlgmr.msra.gmra.mrb[0].mxu0 %vm83_vm1, %v728_v44  ;;  %v143_v44 = vld [vmem:[#allocation2 + $0x140] sm:$0xff] }
  0x3e   :  { %1381 = vmatmul.mubr.msk.bf16.gmra.mrb[16].mxu1 %vm83_vm1, %v217_v43  ;;  %1440 = vmatprep.mubr.msk.bf16.mxu0 %vm83_vm1, %v729_v46  ;;  %v142_v43 = vld [vmem:[#allocation2 + $0x138] sm:$0xff]  ;;  %v722_v46 = vld [vmem:[#allocation2 + $0x142] sm:$0xff] }
  0x3f   :  { %1384 = vmatprep.mubr.msk.bf16.mxu1 %vm83_vm1, %v218_v45  ;;  %v721_v45 = vld [vmem:[#allocation2 + $0x13a] sm:$0xff]  ;;  %v161_v51 = vpack.c.bf16 %v143_v44, %v142_v43 }
  0x40   :  { %v740_v52 = vpack.c.bf16 %v722_v46, %v721_v45 }
  0x45   :  { %1441 = vmatmul.mubr.msk.bf16.gmra.mrb[4].mxu0 %vm83_vm1, %v730_v56  ;;  %v147_v56 = vld [vmem:[#allocation2 + $0x170] sm:$0xff] }
  0x46   :  { %1385 = vmatmul.mubr.msk.bf16.gmra.mrb[20].mxu1 %vm83_vm1, %v219_v55  ;;  %1444 = vmatprep.mubr.msk.bf16.mxu0 %vm83_vm1, %v731_v58  ;;  %v146_v55 = vld [vmem:[#allocation2 + $0x168] sm:$0xff]  ;;  %v726_v58 = vld [vmem:[#allocation2 + $0x172] sm:$0xff] }
  0x47   :  { %1404 = vmatprep.mubr.msk.bf16.mxu1 %vm83_vm1, %v152_v57  ;;  %v725_v57 = vld [vmem:[#allocation2 + $0x16a] sm:$0xff]  ;;  %v163_v59 = vpack.c.bf16 %v147_v56, %v146_v55 }
  0x48   :  { %v742_v60 = vpack.c.bf16 %v726_v58, %v725_v57 }
  0x4d   :  { %1445 = vmatmul.mubr.msk.bf16.gmra.mrb[8].mxu0 %vm83_vm1, %v732_v4 }
  0x4e   :  { %1405 = vmatmul.mubr.msk.bf16.vlgmr.msra.gmra.mrb[0].mxu1 %vm83_vm1, %v153_v3  ;;  %1448 = vmatprep.mubr.msk.bf16.mxu0 %vm83_vm1, %v733_v6 }
  0x4f   :  { %1408 = vmatprep.mubr.msk.bf16.mxu1 %vm83_vm1, %v154_v5 }
  0x55   :  { %1449 = vmatmul.mubr.msk.bf16.gmra.mrb[12].mxu0 %vm83_vm1, %v734_v16 }
  0x56   :  { %1409 = vmatmul.mubr.msk.bf16.gmra.mrb[4].mxu1 %vm83_vm1, %v155_v15  ;;  %1452 = vmatprep.mubr.msk.bf16.mxu0 %vm83_vm1, %v735_v18 }
  0x57   :  { %1412 = vmatprep.mubr.msk.bf16.mxu1 %vm83_vm1, %v156_v17 }
  0x5d   :  { %1453 = vmatmul.mubr.msk.bf16.gmra.mrb[16].mxu0 %vm83_vm1, %v736_v28 }
  0x5e   :  { %1413 = vmatmul.mubr.msk.bf16.gmra.mrb[8].mxu1 %vm83_vm1, %v157_v27  ;;  %1456 = vmatprep.mubr.msk.bf16.mxu0 %vm83_vm1, %v737_v30 }
  0x5f   :  { %1416 = vmatprep.mubr.msk.bf16.mxu1 %vm83_vm1, %v158_v29 }
  0x65   :  { %1457 = vmatmul.mubr.msk.bf16.gmra.mrb[20].mxu0 %vm83_vm1, %v738_v40 }
  0x66   :  { %1417 = vmatmul.mubr.msk.bf16.gmra.mrb[12].mxu1 %vm83_vm1, %v159_v39  ;;  %1460 = vmatprep.mubr.msk.bf16.mxu0 %vm83_vm1, %v739_v42 }
  0x67   :  { %1420 = vmatprep.mubr.msk.bf16.mxu1 %vm83_vm1, %v160_v41 }
  0x6d   :  { %1461 = vmatmul.mubr.msk.bf16.gmra.mrb[24].mxu0 %vm83_vm1, %v740_v52 }
  0x6e   :  { %1421 = vmatmul.mubr.msk.bf16.gmra.mrb[16].mxu1 %vm83_vm1, %v161_v51  ;;  %1464 = vmatprep.mubr.msk.bf16.mxu0 %vm83_vm1, %v741_v54 }
  0x6f   :  { %1424 = vmatprep.mubr.msk.bf16.mxu1 %vm83_vm1, %v162_v53 }
  0x75   :  { %1465 = vmatmul.mubr.msk.bf16.gmra.mrb[28].mxu0 %vm83_vm1, %v742_v60 }
  0x76   :  { %1425 = vmatmul.mubr.msk.bf16.gmra.mrb[20].mxu1 %vm83_vm1, %v163_v59  ;;  %1156 = vmatprep.mubr.f32.mxu0 %v1089_v61 }
  0x77   :  { %1161 = vmatprep.mubr.f32.mxu1 %v1091_v62 }
 0x110   :  { %v1438_v0 = vpop.f32.mrb[0].mxu0 }
 0x111   :  { %v1026_v1 = vadd.f32 %v1438_v0, %v1888_v63  ;;  %v858_v2 = vpop.f32.mrb[1].mxu0 }
 0x112   :  { %v1024_v3 = vadd.f32 %v1888_v63, %v858_v2  ;;  %v1439_v4 = vpop.f32.mrb[2].mxu0 }
 0x113   :  { %v1027_v5 = vadd.f32 %v1439_v4, %v1888_v63  ;;  %v861_v6 = vpop.f32.mrb[3].mxu0  ;;  %v1058_v8 = vmax.f32 %v1026_v1, 0.0 }
 0x114   :  { %v1025_v7 = vadd.f32 %v1888_v63, %v861_v6  ;;  %v1056_v10 = vmax.f32 %v1024_v3, 0.0 }
 0x115   :  { %v1059_v9 = vmax.f32 %v1027_v5, 0.0 }
 0x116   :  { %v1057_v11 = vmax.f32 %v1025_v7, 0.0 }
 0x117   :  { %v1894_v12 = vpack.c.bf16 %v1059_v9, %v1058_v8 }
 0x118   :  { %v1896_v13 = vpack.c.bf16 %v1057_v11, %v1056_v10  ;;  %v1442_v14 = vpop.f32.mrb[4].mxu0 }
 0x119   :  { %v1030_v15 = vadd.f32 %v1442_v14, %v1888_v63  ;;  %v874_v16 = vpop.f32.mrb[5].mxu0 }
 0x11a   :  { %v1028_v17 = vadd.f32 %v1888_v63, %v874_v16  ;;  %v1443_v18 = vpop.f32.mrb[6].mxu0 }
 0x11b   :  { %v1031_v19 = vadd.f32 %v1443_v18, %v1888_v63  ;;  %v877_v20 = vpop.f32.mrb[7].mxu0  ;;  %v1062_v22 = vmax.f32 %v1030_v15, 0.0 }
 0x11c   :  { %v1029_v21 = vadd.f32 %v1888_v63, %v877_v20  ;;  %v1060_v24 = vmax.f32 %v1028_v17, 0.0 }
 0x11d   :  { %v1063_v23 = vmax.f32 %v1031_v19, 0.0 }
 0x11e   :  { %v1061_v25 = vmax.f32 %v1029_v21, 0.0 }
 0x11f   :  { %v1902_v26 = vpack.c.bf16 %v1063_v23, %v1062_v22 }
 0x120   :  { %v1904_v27 = vpack.c.bf16 %v1061_v25, %v1060_v24  ;;  %v1446_v29 = vpop.f32.mrb[8].mxu0 }
 0x121   :  { %v1406_v28 = vpop.f32.mrb[0].mxu1  ;;  %v890_v32 = vpop.f32.mrb[9].mxu0 }
 0x122   :  { %v1532_v30 = vadd.f32 %v1446_v29, %v1406_v28  ;;  %v600_v31 = vpop.f32.mrb[1].mxu1  ;;  %v1447_v35 = vpop.f32.mrb[10].mxu0 }
 0x123   :  { %v1533_v33 = vadd.f32 %v890_v32, %v600_v31  ;;  %v1407_v34 = vpop.f32.mrb[2].mxu1  ;;  %v893_v39 = vpop.f32.mrb[11].mxu0 }
 0x124   :  { %v1034_v36 = vadd.f32 %v1532_v30, %v1888_v63  ;;  %v1534_v37 = vadd.f32 %v1447_v35, %v1407_v34  ;;  %v603_v38 = vpop.f32.mrb[3].mxu1 }
 0x125   :  { %v1032_v40 = vadd.f32 %v1533_v33, %v1888_v63  ;;  %v1535_v41 = vadd.f32 %v893_v39, %v603_v38 }
 0x126   :  { %v1035_v42 = vadd.f32 %v1534_v37, %v1888_v63  ;;  %v1066_v44 = vmax.f32 %v1034_v36, 0.0 }
 0x127   :  { %v1033_v43 = vadd.f32 %v1535_v41, %v1888_v63  ;;  %v1064_v46 = vmax.f32 %v1032_v40, 0.0 }
 0x128   :  { %v1067_v45 = vmax.f32 %v1035_v42, 0.0  ;;  %v1450_v49 = vpop.f32.mrb[12].mxu0 }
 0x129   :  { %v1065_v47 = vmax.f32 %v1033_v43, 0.0  ;;  %v1410_v48 = vpop.f32.mrb[4].mxu1  ;;  %v906_v53 = vpop.f32.mrb[13].mxu0 }
 0x12a   :  { %v1910_v50 = vpack.c.bf16 %v1067_v45, %v1066_v44  ;;  %v1536_v51 = vadd.f32 %v1450_v49, %v1410_v48  ;;  %v616_v52 = vpop.f32.mrb[5].mxu1  ;;  %v1451_v57 = vpop.f32.mrb[14].mxu0 }
 0x12b   :  { %v1912_v54 = vpack.c.bf16 %v1065_v47, %v1064_v46  ;;  %v1537_v55 = vadd.f32 %v906_v53, %v616_v52  ;;  %v1411_v56 = vpop.f32.mrb[6].mxu1  ;;  %v909_v61 = vpop.f32.mrb[15].mxu0 }
 0x12c   :  { %v1038_v58 = vadd.f32 %v1536_v51, %v1888_v63  ;;  %v1538_v59 = vadd.f32 %v1451_v57, %v1411_v56  ;;  %v619_v60 = vpop.f32.mrb[7].mxu1 }
 0x12d   :  { %v1036_v62 = vadd.f32 %v1537_v55, %v1888_v63  ;;  %v1539_v0 = vadd.f32 %v909_v61, %v619_v60 }
 0x12e   :  { %v1039_v1 = vadd.f32 %v1538_v59, %v1888_v63  ;;  %v1070_v3 = vmax.f32 %v1038_v58, 0.0 }
 0x12f   :  { %v1037_v2 = vadd.f32 %v1539_v0, %v1888_v63  ;;  %v1068_v5 = vmax.f32 %v1036_v62, 0.0 }
 0x130   :  { %v1071_v4 = vmax.f32 %v1039_v1, 0.0  ;;  %v1454_v8 = vpop.f32.mrb[16].mxu0 }
 0x131   :  { %v1069_v6 = vmax.f32 %v1037_v2, 0.0  ;;  %v1414_v7 = vpop.f32.mrb[8].mxu1  ;;  %v922_v14 = vpop.f32.mrb[17].mxu0 }
 0x132   :  { %v1918_v9 = vpack.c.bf16 %v1071_v4, %v1070_v3  ;;  %v1540_v10 = vadd.f32 %v1454_v8, %v1414_v7  ;;  %v632_v11 = vpop.f32.mrb[9].mxu1  ;;  %v1455_v18 = vpop.f32.mrb[18].mxu0 }
 0x133   :  { %v1920_v15 = vpack.c.bf16 %v1069_v6, %v1068_v5  ;;  %v1541_v16 = vadd.f32 %v922_v14, %v632_v11  ;;  %v1415_v17 = vpop.f32.mrb[10].mxu1  ;;  %v925_v22 = vpop.f32.mrb[19].mxu0 }
 0x134   :  { %v1042_v19 = vadd.f32 %v1540_v10, %v1888_v63  ;;  %v1542_v20 = vadd.f32 %v1455_v18, %v1415_v17  ;;  %v635_v21 = vpop.f32.mrb[11].mxu1 }
 0x135   :  { %v1040_v23 = vadd.f32 %v1541_v16, %v1888_v63  ;;  %v1543_v24 = vadd.f32 %v925_v22, %v635_v21 }
 0x136   :  { %v1043_v25 = vadd.f32 %v1542_v20, %v1888_v63  ;;  %v1074_v29 = vmax.f32 %v1042_v19, 0.0 }
 0x137   :  { %v1041_v28 = vadd.f32 %v1543_v24, %v1888_v63  ;;  %v1072_v31 = vmax.f32 %v1040_v23, 0.0 }
 0x138   :  { %v1075_v30 = vmax.f32 %v1043_v25, 0.0  ;;  %v1458_v34 = vpop.f32.mrb[20].mxu0 }
 0x139   :  { %v1073_v32 = vmax.f32 %v1041_v28, 0.0  ;;  %v1418_v33 = vpop.f32.mrb[12].mxu1  ;;  %v938_v37 = vpop.f32.mrb[21].mxu0 }
 0x13a   :  { %v1544_v35 = vadd.f32 %v1458_v34, %v1418_v33  ;;  %v648_v36 = vpop.f32.mrb[13].mxu1  ;;  %v1472_v38 = vpack.c.bf16 %v1075_v30, %v1074_v29  ;;  %v1459_v41 = vpop.f32.mrb[22].mxu0 }
 0x13b   :  { %v1545_v39 = vadd.f32 %v938_v37, %v648_v36  ;;  %v1419_v40 = vpop.f32.mrb[14].mxu1  ;;  %v1468_v42 = vpack.c.bf16 %v1073_v32, %v1072_v31  ;;  %v941_v46 = vpop.f32.mrb[23].mxu0 }
 0x13c   :  { %v1046_v43 = vadd.f32 %v1544_v35, %v1888_v63  ;;  %v1546_v44 = vadd.f32 %v1459_v41, %v1419_v40  ;;  %v651_v45 = vpop.f32.mrb[15].mxu1 }
 0x13d   :  { %v1044_v47 = vadd.f32 %v1545_v39, %v1888_v63  ;;  %v1547_v48 = vadd.f32 %v941_v46, %v651_v45  ;;  %1469 = vmatprep.subr.bf16.mxu0 %v1468_v42  ;;  %1516 = vmatprep.subr.bf16.mxu1 %v1468_v42 }
 0x13e   :  { %v1047_v49 = vadd.f32 %v1546_v44, %v1888_v63  ;;  %1471 = vmatpush3.bf16.msra.mxu0 %v1896_v13  ;;  %1524 = vmatpush3.bf16.msra.mxu1 %v1896_v13  ;;  %v1078_v52 = vmax.f32 %v1046_v43, 0.0 }
 0x13f   :  { %v1045_v51 = vadd.f32 %v1547_v48, %v1888_v63  ;;  %1473 = vmatprep.subr.bf16.mxu0 %v1472_v38  ;;  %1517 = vmatprep.subr.bf16.mxu1 %v1472_v38  ;;  %v1076_v55 = vmax.f32 %v1044_v47, 0.0 }
 0x140   :  { %v1079_v53 = vmax.f32 %v1047_v49, 0.0  ;;  %v1462_v58 = vpop.f32.mrb[24].mxu0 }
 0x141   :  { %v1077_v56 = vmax.f32 %v1045_v51, 0.0  ;;  %v1422_v57 = vpop.f32.mrb[16].mxu1  ;;  %v954_v61 = vpop.f32.mrb[25].mxu0 }
 0x142   :  { %v1548_v59 = vadd.f32 %v1462_v58, %v1422_v57  ;;  %v664_v60 = vpop.f32.mrb[17].mxu1  ;;  %1475 = vmatpush3.bf16.msra.mxu0 %v1894_v12  ;;  %1525 = vmatpush3.bf16.msra.mxu1 %v1894_v12  ;;  %v1480_v62 = vpack.c.bf16 %v1079_v53, %v1078_v52  ;;  %v1463_v1 = vpop.f32.mrb[26].mxu0 }
 0x143   :  { %v1549_v0 = vadd.f32 %v954_v61, %v664_v60  ;;  %v1423_v13 = vpop.f32.mrb[18].mxu1  ;;  %v1476_v2 = vpack.c.bf16 %v1077_v56, %v1076_v55  ;;  %v957_v6 = vpop.f32.mrb[27].mxu0 }
 0x144   :  { %v1050_v3 = vadd.f32 %v1548_v59, %v1888_v63  ;;  %v1550_v4 = vadd.f32 %v1463_v1, %v1423_v13  ;;  %v667_v5 = vpop.f32.mrb[19].mxu1 }
 0x145   :  { %v1048_v7 = vadd.f32 %v1549_v0, %v1888_v63  ;;  %v1551_v8 = vadd.f32 %v957_v6, %v667_v5  ;;  %1477 = vmatprep.subr.bf16.mxu0 %v1476_v2  ;;  %1518 = vmatprep.subr.bf16.mxu1 %v1476_v2 }
 0x146   :  { %v1051_v10 = vadd.f32 %v1550_v4, %v1888_v63  ;;  %1479 = vmatpush3.bf16.msra.mxu0 %v1904_v27  ;;  %1526 = vmatpush3.bf16.msra.mxu1 %v1904_v27  ;;  %v1082_v11 = vmax.f32 %v1050_v3, 0.0 }
 0x147   :  { %v1049_v12 = vadd.f32 %v1551_v8, %v1888_v63  ;;  %1481 = vmatprep.subr.bf16.mxu0 %v1480_v62  ;;  %1519 = vmatprep.subr.bf16.mxu1 %v1480_v62  ;;  %v1080_v16 = vmax.f32 %v1048_v7, 0.0 }
 0x148   :  { %v1083_v14 = vmax.f32 %v1051_v10, 0.0  ;;  %v1466_v19 = vpop.f32.mrb[28].mxu0 }
 0x149   :  { %v1081_v17 = vmax.f32 %v1049_v12, 0.0  ;;  %v1426_v18 = vpop.f32.mrb[20].mxu1  ;;  %v970_v22 = vpop.f32.mrb[29].mxu0 }
 0x14a   :  { %v1552_v20 = vadd.f32 %v1466_v19, %v1426_v18  ;;  %v680_v21 = vpop.f32.mrb[21].mxu1  ;;  %1483 = vmatpush3.bf16.msra.mxu0 %v1902_v26  ;;  %1527 = vmatpush3.bf16.msra.mxu1 %v1902_v26  ;;  %v1488_v23 = vpack.c.bf16 %v1083_v14, %v1082_v11  ;;  %v1467_v25 = vpop.f32.mrb[30].mxu0 }
 0x14b   :  { %v1553_v24 = vadd.f32 %v970_v22, %v680_v21  ;;  %v1427_v27 = vpop.f32.mrb[22].mxu1  ;;  %v1484_v28 = vpack.c.bf16 %v1081_v17, %v1080_v16  ;;  %v973_v32 = vpop.f32.mrb[31].mxu0 }
 0x14c   :  { %v1054_v29 = vadd.f32 %v1552_v20, %v1888_v63  ;;  %v1554_v30 = vadd.f32 %v1467_v25, %v1427_v27  ;;  %v683_v31 = vpop.f32.mrb[23].mxu1 }
 0x14d   :  { %v1052_v33 = vadd.f32 %v1553_v24, %v1888_v63  ;;  %v1555_v34 = vadd.f32 %v973_v32, %v683_v31  ;;  %1485 = vmatprep.subr.bf16.mxu0 %v1484_v28  ;;  %1520 = vmatprep.subr.bf16.mxu1 %v1484_v28 }
 0x14e   :  { %v1055_v35 = vadd.f32 %v1554_v30, %v1888_v63  ;;  %1487 = vmatpush3.bf16.msra.mxu0 %v1912_v54  ;;  %1528 = vmatpush3.bf16.msra.mxu1 %v1912_v54  ;;  %v1086_v36 = vmax.f32 %v1054_v29, 0.0 }
 0x14f   :  { %v1053_v26 = vadd.f32 %v1555_v34, %v1888_v63  ;;  %1489 = vmatprep.subr.bf16.mxu0 %v1488_v23  ;;  %1521 = vmatprep.subr.bf16.mxu1 %v1488_v23  ;;  %v1084_v38 = vmax.f32 %v1052_v33, 0.0  ;;  %v1088_v63 = vld [vmem:[%s1968_s3] sm:$0xff] }
 0x150   :  { %v1087_v37 = vmax.f32 %v1055_v35, 0.0 }
 0x151   :  { %v1085_v39 = vmax.f32 %v1053_v26, 0.0 }
 0x152   :  { %1491 = vmatpush3.bf16.msra.mxu0 %v1910_v50  ;;  %1529 = vmatpush3.bf16.msra.mxu1 %v1910_v50  ;;  %v1496_v40 = vpack.c.bf16 %v1087_v37, %v1086_v36  ;;  %v1090_v50 = vld [vmem:[%s1968_s3 + $0x10] sm:$0xff] }
 0x153   :  { %v1492_v41 = vpack.c.bf16 %v1085_v39, %v1084_v38 }
 0x155   :  { %1493 = vmatprep.subr.bf16.mxu0 %v1492_v41  ;;  %1522 = vmatprep.subr.bf16.mxu1 %v1492_v41 }
 0x156   :  { %1495 = vmatpush3.bf16.msra.mxu0 %v1920_v15  ;;  %1530 = vmatpush3.bf16.msra.mxu1 %v1920_v15 }
 0x157   :  { %1497 = vmatprep.subr.bf16.mxu0 %v1496_v40  ;;  %1523 = vmatprep.subr.bf16.mxu1 %v1496_v40 }
 0x15a   :  { %1499 = vmatpush3.bf16.msra.mxu0 %v1918_v9  ;;  %1531 = vmatpush3.bf16.msra.mxu1 %v1918_v9 }
 0x15d   :  { %1157 = vmatmul.mubr.f32.vlgmr.msra.gmra.mrb[32].mxu0 %v1088_v63  ;;  %1162 = vmatmul.mubr.f32.vlgmr.msra.gmra.mrb[24].mxu1 %v1090_v50 }
 0x230   :  { %v1342_v54 = vpop.f32.mrb[32].mxu0  ;;  %v1345_v42 = vpop.f32.mrb[24].mxu1 }
 0x231   :  { %v1343_v43 = vpop.f32.mrb[33].mxu0  ;;  %v1346_v15 = vpop.f32.mrb[25].mxu1 }
 0x232   :  { %v1344_v44 = vadd.f32 %v1343_v43, %v1342_v54  ;;  %v1347_v45 = vadd.f32 %v1346_v15, %v1345_v42 }
 0x234   :  { %1167 = vst [vmem:[%s1970_s4] sm:$0xff] %v1344_v44  ;;  %1168 = vst [vmem:[%s1970_s4 + $0x8] sm:$0xff] %v1347_v45 }

// kernel: full_model_both_forward.3
= control target key start
LH: loop header
LB: loop body
LE: loop exit
PB: predicated region body
PF: predicated region fallthrough
CT: control target
= control target key end

     0   :  { %vm90_vm0 = vcmask 1042432   ;;  %vm65_vm1 = vcmask 23552   ;;  %v2131_v22 = vmov 0.0|0.0   ;;  %vm2132_vm2 = vmmov 0   ;;  %s2136_s19 = smov 32   ;;  %s2661_s6 = inlined_call_operand.vmem [shape: f32[3,8], index: 6, kind: input, shape index: {}]   ;;  %s2662_s2 = inlined_call_operand.vmem [shape: f32[8,8,3], index: 2, kind: input, shape index: {}]   ;;  %s2663_s5 = inlined_call_operand.vmem [shape: f32[3,8], index: 5, kind: input, shape index: {}]   ;;  %s2664_s1 = inlined_call_operand.vmem [shape: f32[8,8,3], index: 1, kind: input, shape index: {}]   ;;  %s2665_s9 = inlined_call_operand.vmem [shape: f32[8,128], index: 9, kind: input, shape index: {}]   ;;  %s2666_s8 = inlined_call_operand.vmem [shape: f32[128,128], index: 8, kind: input, shape index: {}]   ;;  %s2667_s11 = inlined_call_operand.vmem [shape: f32[32,128], index: 11, kind: input, shape index: {}]   ;;  %s2668_s3 = inlined_call_operand.vmem [shape: f32[8,8,1], index: 3, kind: input, shape index: {}]   ;;  %s2669_s7 = inlined_call_operand.vmem [shape: f32[1,8], index: 7, kind: input, shape index: {}]   ;;  %s2670_s0 = inlined_call_operand.vmem [shape: f32[8,8,128], index: 0, kind: input, shape index: {}]   ;;  %s2671_s10 = inlined_call_operand.vmem [shape: f32[1,128], index: 10, kind: input, shape index: {}]   ;;  %s2672_s12 = inlined_call_operand.vmem [shape: f32[1,128], index: 12, kind: input, shape index: {}]   ;;  %s2673_s4 = inlined_call_operand.vmem [shape: s32[8,1], index: 4, kind: input, shape index: {}]   ;;  %s2674_s15 = inlined_call_operand.vmem [shape: f32[8,32], index: 15, kind: output, shape index: {2}]   ;;  %s2675_s13 = inlined_call_operand.vmem [shape: f32[8,256], index: 13, kind: output, shape index: {0}]   ;;  %s2676_s14 = inlined_call_operand.vmem [shape: f32[8,32], index: 14, kind: output, shape index: {1}]  }
   0x1   :  { %v64_v0 = vld [vmem:[%s2661_s6] sm:$0x7]  ;;  %v57_v2 = vld [vmem:[%s2662_s2 + $0x8] sm:$0xff]  ;;  %v58_v4 = vld [vmem:[%s2662_s2 + $0x10] sm:$0xff]  ;;  %v2133_v29 = vmov 0.0   ;;  %v2134_v30 = vmov 0  }
   0x2   :  { %v56_v1 = vld [vmem:[%s2662_s2] sm:$0xff]  ;;  %1788 = vmatprep.subr.msk.mxu0 %vm90_vm0, %v64_v0  ;;  %v59_v5 = vld [vmem:[%s2662_s2 + $0x18] sm:$0xff]  ;;  %v61_v7 = vld [vmem:[%s2662_s2 + $0x28] sm:$0xff]  ;;  %2065 = vset.pattern.permute.xlu0 %v2134_v30  ;;  %vm379_vm3 = vcmask 64512   ;;  %vm714_vm6 = vcmask 261120  }
   0x3   :  { %1790 = vmatprep.mubr.msk.f32.mxu0 %vm65_vm1, %v56_v1  ;;  %v55_v3 = vld [vmem:[%s2663_s5] sm:$0x7]  ;;  %1789 = vmatpush3.msk.msra.mxu0 %vm90_vm0, %v64_v0  ;;  %v62_v8 = vld [vmem:[%s2662_s2 + $0x30] sm:$0xff]  ;;  %v63_v9 = vld [vmem:[%s2662_s2 + $0x38] sm:$0xff] }
   0x4   :  { %1791 = vmatmul.mubr.msk.f32.vlgmr.msra.gmra.mrb[0].mxu0 %vm65_vm1, %v57_v2  ;;  %1802 = vmatprep.subr.msk.mxu0 %vm90_vm0, %v55_v3  ;;  %v60_v6 = vld [vmem:[%s2662_s2 + $0x20] sm:$0xff]  ;;  %v48_v11 = vld [vmem:[%s2664_s1 + $0x8] sm:$0xff]  ;;  %v49_v12 = vld [vmem:[%s2664_s1 + $0x10] sm:$0xff] }
   0x5   :  { %1803 = vmatpush3.msk.msra.mxu0 %vm90_vm0, %v55_v3  ;;  %1793 = vmatprep.mubr.msk.f32.mxu0 %vm65_vm1, %v58_v4  ;;  %v47_v10 = vld [vmem:[%s2664_s1] sm:$0xff]  ;;  %v50_v13 = vld [vmem:[%s2664_s1 + $0x18] sm:$0xff]  ;;  %v52_v15 = vld [vmem:[%s2664_s1 + $0x28] sm:$0xff] }
   0x6   :  { %v51_v14 = vld [vmem:[%s2664_s1 + $0x20] sm:$0xff]  ;;  %v53_v16 = vld [vmem:[%s2664_s1 + $0x30] sm:$0xff]  ;;  %v54_v17 = vld [vmem:[%s2664_s1 + $0x38] sm:$0xff]  ;;  %1994 = vmatprep.subr.bf16.mxu0 %v2131_v22  ;;  %2066 = vset.pattern.permute.xlu1 %v2134_v30 }
   0x7   :  { %v378_v18 = vld [vmem:[%s2665_s9] sm:$0xff]  ;;  %v363_v20 = vld [vmem:[%s2666_s8 + $0x8] sm:$0xff]  ;;  %v711_v26 = vld [vmem:[%s2667_s11 + $0x10] sm:$0xff] }
   0x8   :  { %1794 = vmatmul.mubr.msk.f32.gmra.mrb[2].mxu0 %vm65_vm1, %v59_v5  ;;  %v362_v19 = vld [vmem:[%s2666_s8] sm:$0xff]  ;;  %1816 = vmatprep.subr.mxu1 %v378_v18  ;;  %v710_v24 = vld [vmem:[%s2667_s11 + $0x8] sm:$0xff]  ;;  %v712_v27 = vld [vmem:[%s2667_s11 + $0x18] sm:$0xff] }
   0x9   :  { %1796 = vmatprep.mubr.msk.f32.mxu0 %vm65_vm1, %v60_v6  ;;  %v1962_v21 = vpack.c.bf16 %v363_v20, %v362_v19  ;;  %1817 = vmatpush3.msra.mxu1 %v378_v18  ;;  %v709_v23 = vld [vmem:[%s2667_s11] sm:$0xff]  ;;  %v2314_v28 = vpack.c.bf16 %v712_v27, %v711_v26  ;;  %v364_v37 = vld [vmem:[%s2666_s8 + $0x10] sm:$0xff]  ;;  %v365_v38 = vld [vmem:[%s2666_s8 + $0x18] sm:$0xff] }
   0xa   :  { %v2304_v25 = vpack.c.bf16 %v710_v24, %v709_v23  ;;  %v614_v31 = vld [vmem:[%s2668_s3] sm:$0xff]  ;;  %v1966_v44 = vpack.c.bf16 %v365_v38, %v364_v37  ;;  %v367_v47 = vld [vmem:[%s2666_s8 + $0x28] sm:$0xff]  ;;  %v368_v55 = vld [vmem:[%s2666_s8 + $0x30] sm:$0xff] }
   0xb   :  { %1963 = vmatprep.subr.bf16.mxu1 %v1962_v21  ;;  %625 = vperm.xlu0 %2065, %v614_v31   ;;  %v1670_v32 = vld [vmem:[%s2669_s7] ss:$0 sm:$0xff]  ;;  %v369_v56 = vld [vmem:[%s2666_s8 + $0x38] sm:$0xff]  ;;  %v371_v1 = vld [vmem:[%s2666_s8 + $0x48] sm:$0xff] }
   0xc   :  { %1797 = vmatmul.mubr.msk.f32.gmra.mrb[4].mxu0 %vm65_vm1, %v61_v7  ;;  %v366_v46 = vld [vmem:[%s2666_s8 + $0x20] sm:$0xff]  ;;  %v1974_v62 = vpack.c.bf16 %v369_v56, %v368_v55  ;;  %v372_v6 = vld [vmem:[%s2666_s8 + $0x50] sm:$0xff]  ;;  %v373_v7 = vld [vmem:[%s2666_s8 + $0x58] sm:$0xff] }
   0xd   :  { %1799 = vmatprep.mubr.msk.f32.mxu0 %vm65_vm1, %v62_v8  ;;  %v1970_v53 = vpack.c.bf16 %v367_v47, %v366_v46  ;;  %v370_v0 = vld [vmem:[%s2666_s8 + $0x40] sm:$0xff]  ;;  %v1982_v8 = vpack.c.bf16 %v373_v7, %v372_v6  ;;  %v359_v19 = vld [vmem:[%s2670_s0 + $0x28] sm:$0xff]  ;;  %v360_v20 = vld [vmem:[%s2670_s0 + $0x30] sm:$0xff] }
   0xe   :  { %v1978_v4 = vpack.c.bf16 %v371_v1, %v370_v0  ;;  %v354_v5 = vld [vmem:[%s2670_s0] sm:$0xff] }
   0xf   :  { %v358_v18 = vld [vmem:[%s2670_s0 + $0x20] sm:$0xff] }
  0x10   :  { %1800 = vmatmul.mubr.msk.f32.gmra.mrb[6].mxu0 %vm65_vm1, %v63_v9  ;;  %v374_v9 = vld [vmem:[%s2666_s8 + $0x60] sm:$0xff] }
  0x11   :  { %1804 = vmatprep.mubr.msk.f32.mxu0 %vm65_vm1, %v47_v10  ;;  %v375_v10 = vld [vmem:[%s2666_s8 + $0x68] sm:$0xff]  ;;  %v2419_v26 = vld [vmem:[%s2671_s10] ss:$0 sm:$0xff] }
  0x14   :  { %1805 = vmatmul.mubr.msk.f32.vlgmr.msra.gmra.mrb[0].mxu0 %vm65_vm1, %v48_v11  ;;  %v1986_v11 = vpack.c.bf16 %v375_v10, %v374_v9 }
  0x15   :  { %1807 = vmatprep.mubr.msk.f32.mxu0 %vm65_vm1, %v49_v12  ;;  %1996 = vmatpush3.bf16.msra.mxu0 %v2304_v25  ;;  %v376_v12 = vld [vmem:[%s2666_s8 + $0x70] sm:$0xff] }
  0x16   :  { %1997 = vmatprep.subr.bf16.mxu0 %v2131_v22 }
  0x18   :  { %1808 = vmatmul.mubr.msk.f32.gmra.mrb[2].mxu0 %vm65_vm1, %v50_v13  ;;  %v377_v13 = vld [vmem:[%s2666_s8 + $0x78] sm:$0xff] }
  0x19   :  { %1810 = vmatprep.mubr.msk.f32.mxu0 %vm65_vm1, %v51_v14  ;;  %1999 = vmatpush3.bf16.msra.mxu0 %v2314_v28  ;;  %v1990_v14 = vpack.c.bf16 %v377_v13, %v376_v12 }
  0x1a   :  { %2000 = vmatprep.subr.bf16.mxu0 %v2131_v22 }
  0x1c   :  { %1811 = vmatmul.mubr.msk.f32.gmra.mrb[4].mxu0 %vm65_vm1, %v52_v15  ;;  %v355_v15 = vld [vmem:[%s2670_s0 + $0x8] sm:$0xff] }
  0x1d   :  { %1813 = vmatprep.mubr.msk.f32.mxu0 %vm65_vm1, %v53_v16  ;;  %v356_v16 = vld [vmem:[%s2670_s0 + $0x10] sm:$0xff] }
  0x20   :  { %1814 = vmatmul.mubr.msk.f32.gmra.mrb[6].mxu0 %vm65_vm1, %v54_v17  ;;  %v357_v17 = vld [vmem:[%s2670_s0 + $0x18] sm:$0xff] }
  0x21   :  { %1882 = vmatprep.mubr.msk.f32.mxu0 %vm2132_vm2, %v2133_v29 }
  0x24   :  { %1883 = vmatmul.mubr.f32.vlgmr.msra.gmra.mrb[8].mxu0 %v2133_v29 }
  0x25   :  { %2002 = vmatpush3.bf16.msra.mxu0 %v2304_v25  ;;  %1893 = vmatprep.mubr.msk.f32.mxu0 %vm2132_vm2, %v2133_v29 }
  0x26   :  { %2003 = vmatprep.subr.bf16.mxu0 %v2131_v22 }
  0x29   :  { %2005 = vmatpush3.bf16.msra.mxu0 %v2314_v28 }
  0x2a   :  { %2006 = vmatprep.subr.bf16.mxu0 %v2131_v22 }
  0x8a   :  { %v626_v27 = vpop.permute.xlu0 %625 }
  0x8b   :  { %v669_v31 = vmul.f32 %v2419_v26, %v626_v27 }
  0xe7   :  { %v1806_v33 = vpop.f32.mrb[0].mxu0 }
  0xe8   :  { %v339_v34 = vadd.f32 %v1806_v33, %v1670_v32  ;;  %v292_v35 = vpop.f32.mrb[1].mxu0 }
  0xe9   :  { %v338_v36 = vadd.f32 %v1670_v32, %v292_v35 }
  0xea   :  { %v347_v41 = vmax.f32 %v339_v34, 0.0  ;;  %v2425_v34 = vld [vmem:[%s2672_s12] ss:$0 sm:$0xff] }
  0xeb   :  { %v346_v39 = vmax.f32 %v338_v36, 0.0  ;;  %v1809_v40 = vpop.f32.mrb[2].mxu0 }
  0xec   :  { %v341_v42 = vadd.f32 %v1809_v40, %v1670_v32  ;;  %v302_v43 = vpop.f32.mrb[3].mxu0 }
  0xed   :  { %v340_v45 = vadd.f32 %v1670_v32, %v302_v43  ;;  %1818 = vmatprep.mubr.msk.f32.mxu1 %vm379_vm3, %v346_v39 }
  0xee   :  { %1819 = vmatmul.mubr.msk.f32.vlgmr.msra.gmra.mrb[0].mxu1 %vm379_vm3, %v347_v41  ;;  %v349_v50 = vmax.f32 %v341_v42, 0.0 }
  0xef   :  { %v348_v48 = vmax.f32 %v340_v45, 0.0  ;;  %1965 = vmatpush3.bf16.msra.mxu1 %v1962_v21  ;;  %v1812_v49 = vpop.f32.mrb[4].mxu0  ;;  %v361_v21 = vld [vmem:[%s2670_s0 + $0x38] sm:$0xff]  ;;  %s2135_s0 = smov 64  }
  0xf0   :  { %v343_v51 = vadd.f32 %v1812_v49, %v1670_v32  ;;  %v312_v52 = vpop.f32.mrb[5].mxu0  ;;  %1967 = vmatprep.subr.bf16.mxu1 %v1966_v44 }
  0xf1   :  { %v342_v54 = vadd.f32 %v1670_v32, %v312_v52  ;;  %1821 = vmatprep.mubr.msk.f32.mxu1 %vm379_vm3, %v348_v48  ;;  %v2444_v48 = vld [vmem:[%s2673_s4] sm:$0xff] }
  0xf2   :  { %1822 = vmatmul.mubr.msk.f32.gmra.mrb[2].mxu1 %vm379_vm3, %v349_v50  ;;  %v351_v59 = vmax.f32 %v343_v51, 0.0  ;;  %vm813_vm4 = vcmp.gt.s32.totalorder %v2444_v48, 0  ;;  %vm923_vm7 = vcmp.gt.s32.totalorder %v2444_v48, 1  ;;  %vm1034_vm9 = vcmp.gt.s32.totalorder %v2444_v48, 2 }
  0xf3   :  { %v350_v57 = vmax.f32 %v342_v54, 0.0  ;;  %1969 = vmatpush3.bf16.msra.mxu1 %v1966_v44  ;;  %v1815_v58 = vpop.f32.mrb[6].mxu0  ;;  %v814_v52 = vsel %vm813_vm4, 1, %v2134_v30  ;;  %v924_v7 = vsel %vm923_vm7, 1, %v2134_v30  ;;  %vm1145_vm11 = vcmp.gt.s32.totalorder %v2444_v48, 3 }
  0xf4   :  { %v345_v60 = vadd.f32 %v1815_v58, %v1670_v32  ;;  %v322_v61 = vpop.f32.mrb[7].mxu0  ;;  %1971 = vmatprep.subr.bf16.mxu1 %v1970_v53  ;;  %vm1271_vm13 = vcmp.gt.s32.totalorder %v2444_v48, 4  ;;  %vm1382_vm15 = vcmp.gt.s32.totalorder %v2444_v48, 5  ;;  %vm1493_vm1 = vcmp.gt.s32.totalorder %v2444_v48, 6 }
  0xf5   :  { %v344_v63 = vadd.f32 %v1670_v32, %v322_v61  ;;  %1824 = vmatprep.mubr.msk.f32.mxu1 %vm379_vm3, %v350_v57  ;;  %v615_v57 = vld [vmem:[%s2668_s3 + $0x8] sm:$0xff]  ;;  %vm1166_vm7 = vcmask 785408  }
  0xf6   :  { %1825 = vmatmul.mubr.msk.f32.gmra.mrb[4].mxu1 %vm379_vm3, %v351_v59  ;;  %v353_v3 = vmax.f32 %v345_v60, 0.0 }
  0xf7   :  { %v352_v2 = vmax.f32 %v344_v63, 0.0  ;;  %1973 = vmatpush3.bf16.msra.mxu1 %v1970_v53  ;;  %v784_v23 = vpop.f32.mrb[8].mxu0 }
  0xf8   :  { %1975 = vmatprep.subr.bf16.mxu1 %v1974_v62  ;;  %v1884_v24 = vpop.f32.mrb[9].mxu0 }
  0xf9   :  { %1827 = vmatprep.mubr.msk.f32.mxu1 %vm379_vm3, %v352_v2 }
  0xfa   :  { %1828 = vmatmul.mubr.msk.f32.gmra.mrb[6].mxu1 %vm379_vm3, %v353_v3  ;;  %vm1604_vm3 = vcmp.gt.s32.totalorder %v2444_v48, 7 }
  0xfb   :  { %1977 = vmatpush3.bf16.msra.mxu1 %v1974_v62  ;;  %1862 = vmatprep.mubr.f32.mxu1 %v354_v5 }
  0xfc   :  { %1979 = vmatprep.subr.bf16.mxu1 %v1978_v4 }
  0xff   :  { %1981 = vmatpush3.bf16.msra.mxu1 %v1978_v4 }
 0x100   :  { %1983 = vmatprep.subr.bf16.mxu1 %v1982_v8 }
 0x103   :  { %1985 = vmatpush3.bf16.msra.mxu1 %v1982_v8 }
 0x104   :  { %1987 = vmatprep.subr.bf16.mxu1 %v1986_v11 }
 0x107   :  { %1989 = vmatpush3.bf16.msra.mxu1 %v1986_v11 }
 0x108   :  { %1991 = vmatprep.subr.bf16.mxu1 %v1990_v14 }
 0x10b   :  { %1993 = vmatpush3.bf16.msra.mxu1 %v1990_v14 }
 0x10c   :  { %2012 = vmatprep.subr.bf16.mxu1 %v2131_v22 }
 0x10e   :  { %1863 = vmatmul.mubr.f32.vlgmr.msra.gmra.mrb[0].mxu1 %v355_v15 }
 0x10f   :  { %1865 = vmatprep.mubr.f32.mxu1 %v356_v16  ;;  %2014 = vmatpush3.bf16.msra.mxu1 %v2304_v25 }
 0x110   :  { %2015 = vmatprep.subr.bf16.mxu1 %v2131_v22 }
 0x112   :  { %1866 = vmatmul.mubr.f32.gmra.mrb[2].mxu1 %v357_v17 }
 0x113   :  { %1868 = vmatprep.mubr.f32.mxu1 %v358_v18  ;;  %2017 = vmatpush3.bf16.msra.mxu1 %v2314_v28 }
 0x114   :  { %2024 = vmatprep.subr.bf16.mxu1 %v2131_v22 }
 0x116   :  { %1869 = vmatmul.mubr.f32.gmra.mrb[4].mxu1 %v359_v19  ;;  %v616_v19 = vld [vmem:[%s2668_s3 + $0x10] sm:$0xff] }
 0x117   :  { %1871 = vmatprep.mubr.f32.mxu1 %v360_v20 }
 0x11a   :  { %1872 = vmatmul.mubr.f32.gmra.mrb[6].mxu1 %v361_v21 }
 0x11b   :  { %1915 = vmatprep.mubr.msk.f32.mxu1 %vm2132_vm2, %v2133_v29 }
 0x1e1   :  { %v1864_v32 = vpop.f32.mrb[0].mxu1 }
 0x1e2   :  { %v575_v33 = vpop.f32.mrb[1].mxu1 }
 0x1e3   :  { %v677_v35 = vadd.f32 %v669_v31, %v575_v33 }
 0x1e5   :  { %v2427_v36 = vpop.f32.mrb[2].mxu1  ;;  %v692_v37 = vadd.f32 %v2425_v34, %v677_v35 }
 0x1e6   :  { %v2430_v38 = vpop.f32.mrb[3].mxu1 }
 0x1e7   :  { %v788_v39 = vadd.f32 %v784_v23, %v692_v37 }
 0x1e9   :  { %2067 = vtanh.f32 %v788_v39  ;;  %v2432_v40 = vpop.f32.mrb[4].mxu1  ;;  %v1681_v45 = vmul.f32 -1.442695, %v788_v39 }
 0x1ea   :  { %v2434_v41 = vpop.f32.mrb[5].mxu1 }
 0x1eb   :  { %2069 = vpow2.f32 %v1681_v45 }
 0x1ed   :  { %v2436_v42 = vpop.f32.mrb[6].mxu1 }
 0x1ee   :  { %v2438_v43 = vpop.f32.mrb[7].mxu1 }
 0x1f3   :  { %v2068_v44 = vpop.eup %2067 }
 0x1f4   :  { %798 = vrot.lane.b32.xlu0 %v2068_v44, %s2135_s0 }
 0x1f5   :  { %v2070_v46 = vpop.eup %2069 }
 0x1f6   :  { %v792_v47 = vadd.f32 1.0, %v2070_v46  ;;  %v1035_v46 = vsel %vm1034_vm9, 1, %v2134_v30 }
 0x1f8   :  { %2071 = vrcp.f32 %v792_v47 }
 0x202   :  { %v2072_v49 = vpop.eup %2071 }
 0x203   :  { %v796_v53 = vmul.f32 0.0, %v2072_v49 }
 0x266   :  { %v799_v50 = vpop.permute.xlu0 %798 }
 0x267   :  { %v801_v51 = vmul.f32 %v2072_v49, %v799_v50 }
 0x269   :  { %803 = vrot.lane.b32.xlu1 %v801_v51, %s2136_s19 }
 0x26d   :  { %816 = vperm.xlu1 %2066, %v814_v52  }
 0x2db   :  { %v804_v54 = vpop.permute.xlu1 %803 }
 0x2dc   :  { %v806_v55 = vadd.f32 %v804_v54, %v796_v53 }
 0x2de   :  { %2073 = vtanh.f32 %v806_v55 }
 0x2e8   :  { %v2074_v56 = vpop.eup %2073 }
 0x2e9   :  { %809 = vrot.lane.b32.xlu0 %v2074_v56, %s2135_s0 }
 0x2ec   :  { %v817_v58 = vpop.permute.xlu1 %816 }
 0x2ed   :  { %630 = vperm.xlu0 %2065, %v615_v57   ;;  %vm818_vm5 = vcmp.eq.s32.totalorder %v817_v58, 1  ;;  %v617_v58 = vld [vmem:[%s2668_s3 + $0x18] sm:$0xff] }
 0x2ee   :  { %v820_v14 = vsel %vm818_vm5, %v806_v55, 0.0 }
 0x35b   :  { %v810_v59 = vpop.permute.xlu0 %809 }
 0x35c   :  { %v812_v60 = vmul.f32 %v2072_v49, %v810_v59 }
 0x35e   :  { %v819_v61 = vsel %vm818_vm5, %v812_v60, 0.0  ;;  %vm1164_vm5 = vcmask 523264  }
 0x35f   :  { %824 = vrot.lane.b32.xlu1 %v819_v61, %s2136_s19 }
 0x36c   :  { %v631_v63 = vpop.permute.xlu0 %630 }
 0x36d   :  { %v670_v0 = vmul.f32 %v2419_v26, %v631_v63 }
 0x36f   :  { %v678_v1 = vadd.f32 %v1864_v32, %v670_v0 }
 0x371   :  { %v693_v2 = vadd.f32 %v2425_v34, %v678_v1 }
 0x3d1   :  { %v2455_v62 = vpop.permute.xlu1 %824 }
 0x3d2   :  { %1894 = vmatmul.mubr.msk.f32.vlgmr.msra.gmra.mrb[10].mxu0 %vm714_vm6, %v2455_v62 }
 0x3d3   :  { %2008 = vmatpush3.bf16.msra.mxu0 %v2304_v25  ;;  %1904 = vmatprep.mubr.msk.f32.mxu0 %vm2132_vm2, %v2133_v29 }
 0x3d4   :  { %2009 = vmatprep.subr.bf16.mxu0 %v2131_v22 }
 0x3d7   :  { %2011 = vmatpush3.bf16.msra.mxu0 %v2314_v28 }
 0x3d8   :  { %2018 = vmatprep.subr.bf16.mxu0 %v2131_v22 }
 0x4a5   :  { %v894_v3 = vpop.f32.mrb[10].mxu0 }
 0x4a6   :  { %v898_v4 = vadd.f32 %v894_v3, %v693_v2  ;;  %v1895_v5 = vpop.f32.mrb[11].mxu0 }
 0x4a8   :  { %2075 = vtanh.f32 %v898_v4  ;;  %v1683_v8 = vmul.f32 -1.442695, %v898_v4 }
 0x4aa   :  { %2077 = vpow2.f32 %v1683_v8 }
 0x4b2   :  { %v2076_v6 = vpop.eup %2075 }
 0x4b3   :  { %908 = vrot.lane.b32.xlu1 %v2076_v6, %s2135_s0 }
 0x4b4   :  { %v2078_v9 = vpop.eup %2077 }
 0x4b5   :  { %v902_v10 = vadd.f32 1.0, %v2078_v9  ;;  %v1146_v9 = vsel %vm1145_vm11, 1, %v2134_v30 }
 0x4b7   :  { %926 = vperm.xlu1 %2066, %v924_v7   ;;  %2079 = vrcp.f32 %v902_v10 }
 0x4c1   :  { %v2080_v11 = vpop.eup %2079 }
 0x4c2   :  { %v906_v15 = vmul.f32 %v2080_v11, %v820_v14 }
 0x525   :  { %v909_v12 = vpop.permute.xlu1 %908 }
 0x526   :  { %v911_v13 = vmul.f32 %v2080_v11, %v909_v12 }
 0x528   :  { %913 = vrot.lane.b32.xlu0 %v911_v13, %s2136_s19 }
 0x536   :  { %v2476_v20 = vpop.permute.xlu1 %926 }
 0x537   :  { %vm928_vm8 = vcmp.eq.s32.totalorder %v2476_v20, 1 }
 0x59a   :  { %v914_v16 = vpop.permute.xlu0 %913 }
 0x59b   :  { %v916_v17 = vadd.f32 %v914_v16, %v906_v15 }
 0x59d   :  { %2081 = vtanh.f32 %v916_v17  ;;  %v931_v53 = vsel %vm928_vm8, %v916_v17, %v820_v14 }
 0x5a7   :  { %v2082_v18 = vpop.eup %2081 }
 0x5a8   :  { %919 = vrot.lane.b32.xlu0 %v2082_v18, %s2135_s0 }
 0x5ac   :  { %635 = vperm.xlu0 %2065, %v616_v19  }
 0x61a   :  { %v920_v21 = vpop.permute.xlu0 %919 }
 0x61b   :  { %v2478_v23 = vmul.f32 %v2080_v11, %v920_v21  ;;  %v618_v21 = vld [vmem:[%s2668_s3 + $0x20] sm:$0xff] }
 0x61d   :  { %v930_v24 = vsel %vm928_vm8, %v2478_v23, %v819_v61 }
 0x61e   :  { %935 = vrot.lane.b32.xlu1 %v930_v24, %s2136_s19 }
 0x62b   :  { %v636_v31 = vpop.permute.xlu0 %635 }
 0x62c   :  { %v671_v32 = vmul.f32 %v2419_v26, %v636_v31 }
 0x62e   :  { %v679_v33 = vadd.f32 %v671_v32, %v2430_v38 }
 0x630   :  { %v694_v35 = vadd.f32 %v2425_v34, %v679_v33 }
 0x690   :  { %v936_v27 = vpop.permute.xlu1 %935 }
 0x691   :  { %1905 = vmatmul.mubr.msk.f32.vlgmr.msra.gmra.mrb[12].mxu0 %vm714_vm6, %v936_v27 }
 0x692   :  { %2020 = vmatpush3.bf16.msra.mxu0 %v2304_v25  ;;  %1926 = vmatprep.mubr.msk.f32.mxu0 %vm2132_vm2, %v2133_v29 }
 0x693   :  { %2021 = vmatprep.subr.bf16.mxu0 %v2131_v22 }
 0x696   :  { %2023 = vmatpush3.bf16.msra.mxu0 %v2314_v28 }
 0x697   :  { %2030 = vmatprep.subr.bf16.mxu0 %v2131_v22 }
 0x764   :  { %v1005_v37 = vpop.f32.mrb[12].mxu0 }
 0x765   :  { %v1009_v39 = vadd.f32 %v1005_v37, %v694_v35  ;;  %v1906_v44 = vpop.f32.mrb[13].mxu0 }
 0x767   :  { %2083 = vtanh.f32 %v1009_v39  ;;  %v1685_v47 = vmul.f32 -1.442695, %v1009_v39 }
 0x769   :  { %2085 = vpow2.f32 %v1685_v47 }
 0x771   :  { %v2084_v45 = vpop.eup %2083 }
 0x772   :  { %1019 = vrot.lane.b32.xlu1 %v2084_v45, %s2135_s0 }
 0x773   :  { %v2086_v49 = vpop.eup %2085 }
 0x774   :  { %v1013_v50 = vadd.f32 1.0, %v2086_v49 }
 0x776   :  { %1037 = vperm.xlu1 %2066, %v1035_v46   ;;  %2087 = vrcp.f32 %v1013_v50  ;;  %v1272_v50 = vsel %vm1271_vm13, 1, %v2134_v30 }
 0x780   :  { %v2088_v38 = vpop.eup %2087 }
 0x781   :  { %v1017_v54 = vmul.f32 %v2088_v38, %v931_v53 }
 0x7e4   :  { %v1020_v51 = vpop.permute.xlu1 %1019 }
 0x7e5   :  { %v1022_v52 = vmul.f32 %v2088_v38, %v1020_v51 }
 0x7e7   :  { %1024 = vrot.lane.b32.xlu0 %v1022_v52, %s2136_s19 }
 0x7f5   :  { %v2505_v59 = vpop.permute.xlu1 %1037 }
 0x7f6   :  { %vm1039_vm10 = vcmp.eq.s32.totalorder %v2505_v59, 1 }
 0x859   :  { %v1025_v55 = vpop.permute.xlu0 %1024 }
 0x85a   :  { %v1027_v56 = vadd.f32 %v1025_v55, %v1017_v54 }
 0x85c   :  { %2089 = vtanh.f32 %v1027_v56  ;;  %v1042_v15 = vsel %vm1039_vm10, %v1027_v56, %v931_v53 }
 0x866   :  { %v2090_v57 = vpop.eup %2089 }
 0x867   :  { %1030 = vrot.lane.b32.xlu0 %v2090_v57, %s2135_s0 }
 0x86b   :  { %640 = vperm.xlu0 %2065, %v617_v58  }
 0x8d9   :  { %v1031_v60 = vpop.permute.xlu0 %1030 }
 0x8da   :  { %v2507_v61 = vmul.f32 %v2088_v38, %v1031_v60 }
 0x8dc   :  { %v1041_v63 = vsel %vm1039_vm10, %v2507_v61, %v930_v24 }
 0x8dd   :  { %1046 = vrot.lane.b32.xlu1 %v1041_v63, %s2136_s19 }
 0x8ea   :  { %v641_v1 = vpop.permute.xlu0 %640 }
 0x8eb   :  { %v672_v2 = vmul.f32 %v2419_v26, %v641_v1 }
 0x8ed   :  { %v680_v3 = vadd.f32 %v2427_v36, %v672_v2 }
 0x8ef   :  { %v695_v4 = vadd.f32 %v2425_v34, %v680_v3 }
 0x94f   :  { %v1047_v0 = vpop.permute.xlu1 %1046 }
 0x950   :  { %1916 = vmatmul.mubr.msk.f32.vlgmr.msra.gmra.mrb[8].mxu1 %vm714_vm6, %v1047_v0 }
 0x951   :  { %2026 = vmatpush3.bf16.msra.mxu1 %v2304_v25  ;;  %1937 = vmatprep.mubr.msk.f32.mxu1 %vm2132_vm2, %v2133_v29 }
 0x952   :  { %2027 = vmatprep.subr.bf16.mxu1 %v2131_v22 }
 0x955   :  { %2029 = vmatpush3.bf16.msra.mxu1 %v2314_v28 }
 0x956   :  { %2036 = vmatprep.subr.bf16.mxu1 %v2131_v22 }
 0xa23   :  { %v1116_v5 = vpop.f32.mrb[8].mxu1 }
 0xa24   :  { %v1120_v6 = vadd.f32 %v1116_v5, %v695_v4  ;;  %v1917_v7 = vpop.f32.mrb[9].mxu1 }
 0xa26   :  { %2091 = vtanh.f32 %v1120_v6  ;;  %v1687_v10 = vmul.f32 -1.442695, %v1120_v6 }
 0xa28   :  { %2093 = vpow2.f32 %v1687_v10 }
 0xa30   :  { %v2092_v8 = vpop.eup %2091 }
 0xa31   :  { %1130 = vrot.lane.b32.xlu1 %v2092_v8, %s2135_s0 }
 0xa32   :  { %v2094_v11 = vpop.eup %2093 }
 0xa33   :  { %v1124_v12 = vadd.f32 1.0, %v2094_v11 }
 0xa35   :  { %1148 = vperm.xlu1 %2066, %v1146_v9   ;;  %2095 = vrcp.f32 %v1124_v12 }
 0xa3f   :  { %v2096_v36 = vpop.eup %2095 }
 0xa40   :  { %v1128_v16 = vmul.f32 %v2096_v36, %v1042_v15 }
 0xaa3   :  { %v1131_v13 = vpop.permute.xlu1 %1130 }
 0xaa4   :  { %v1133_v14 = vmul.f32 %v2096_v36, %v1131_v13 }
 0xaa6   :  { %1135 = vrot.lane.b32.xlu0 %v1133_v14, %s2136_s19 }
 0xab4   :  { %v2534_v24 = vpop.permute.xlu1 %1148 }
 0xab5   :  { %vm1150_vm12 = vcmp.eq.s32.totalorder %v2534_v24, 1 }
 0xb18   :  { %v1136_v17 = vpop.permute.xlu0 %1135 }
 0xb19   :  { %v1138_v18 = vadd.f32 %v1136_v17, %v1128_v16 }
 0xb1b   :  { %2097 = vtanh.f32 %v1138_v18  ;;  %v1153_v55 = vsel %vm1150_vm12, %v1138_v18, %v1042_v15 }
 0xb25   :  { %v2098_v19 = vpop.eup %2097 }
 0xb26   :  { %1141 = vrot.lane.b32.xlu0 %v2098_v19, %s2135_s0  ;;  %v620_v19 = vld [vmem:[%s2668_s3 + $0x30] sm:$0xff] }
 0xb2a   :  { %645 = vperm.xlu0 %2065, %v618_v21  }
 0xb98   :  { %v1142_v27 = vpop.permute.xlu0 %1141 }
 0xb99   :  { %v2536_v31 = vmul.f32 %v2096_v36, %v1142_v27 }
 0xb9b   :  { %v1152_v32 = vsel %vm1150_vm12, %v2536_v31, %v1041_v63  ;;  %v619_v63 = vld [vmem:[%s2668_s3 + $0x28] sm:$0xff] }
 0xb9c   :  { %1172 = vrot.lane.b32.xlu1 %v1152_v32, %s2136_s19 }
 0xba9   :  { %v646_v35 = vpop.permute.xlu0 %645 }
 0xbaa   :  { %v673_v37 = vmul.f32 %v2419_v26, %v646_v35 }
 0xbac   :  { %v681_v39 = vadd.f32 %v673_v37, %v2434_v41 }
 0xbae   :  { %v696_v44 = vadd.f32 %v2425_v34, %v681_v39 }
 0xc0e   :  { %v1173_v33 = vpop.permute.xlu1 %1172 }
 0xc0f   :  { %1927 = vmatmul.mubr.msk.f32.vlgmr.msra.gmra.mrb[14].mxu0 %vm714_vm6, %v1173_v33 }
 0xc10   :  { %2032 = vmatpush3.bf16.msra.mxu0 %v2304_v25  ;;  %1948 = vmatprep.mubr.msk.f32.mxu0 %vm2132_vm2, %v2133_v29 }
 0xc11   :  { %2033 = vmatprep.subr.bf16.mxu0 %v2131_v22 }
 0xc14   :  { %2035 = vmatpush3.bf16.msra.mxu0 %v2314_v28 }
 0xce2   :  { %v1242_v45 = vpop.f32.mrb[14].mxu0 }
 0xce3   :  { %v1246_v46 = vadd.f32 %v1242_v45, %v696_v44  ;;  %v1928_v47 = vpop.f32.mrb[15].mxu0 }
 0xce5   :  { %2099 = vtanh.f32 %v1246_v46  ;;  %v1689_v38 = vmul.f32 -1.442695, %v1246_v46 }
 0xce7   :  { %2101 = vpow2.f32 %v1689_v38  ;;  %v1494_v38 = vsel %vm1493_vm1, 1, %v2134_v30 }
 0xcef   :  { %v2100_v49 = vpop.eup %2099 }
 0xcf0   :  { %1256 = vrot.lane.b32.xlu1 %v2100_v49, %s2135_s0 }
 0xcf1   :  { %v2102_v51 = vpop.eup %2101 }
 0xcf2   :  { %v1250_v52 = vadd.f32 1.0, %v2102_v51 }
 0xcf4   :  { %1274 = vperm.xlu1 %2066, %v1272_v50   ;;  %2103 = vrcp.f32 %v1250_v52 }
 0xcfe   :  { %v2104_v41 = vpop.eup %2103 }
 0xcff   :  { %v1254_v56 = vmul.f32 %v2104_v41, %v1153_v55 }
 0xd62   :  { %v1257_v53 = vpop.permute.xlu1 %1256 }
 0xd63   :  { %v1259_v54 = vmul.f32 %v2104_v41, %v1257_v53 }
 0xd65   :  { %1261 = vrot.lane.b32.xlu0 %v1259_v54, %s2136_s19 }
 0xd73   :  { %v2562_v0 = vpop.permute.xlu1 %1274 }
 0xd74   :  { %vm1276_vm14 = vcmp.eq.s32.totalorder %v2562_v0, 1 }
 0xdd7   :  { %v1262_v57 = vpop.permute.xlu0 %1261 }
 0xdd8   :  { %v1264_v58 = vadd.f32 %v1262_v57, %v1254_v56 }
 0xdda   :  { %2105 = vtanh.f32 %v1264_v58  ;;  %v1279_v14 = vsel %vm1276_vm14, %v1264_v58, %v1153_v55 }
 0xde4   :  { %v2106_v60 = vpop.eup %2105 }
 0xde5   :  { %1267 = vrot.lane.b32.xlu0 %v2106_v60, %s2135_s0 }
 0xde9   :  { %650 = vperm.xlu0 %2065, %v619_v63   ;;  %v621_v63 = vld [vmem:[%s2668_s3 + $0x38] sm:$0xff]  ;;  %s2137_s3 = smov 96  }
 0xe57   :  { %v1268_v1 = vpop.permute.xlu0 %1267 }
 0xe58   :  { %v2564_v2 = vmul.f32 %v2104_v41, %v1268_v1 }
 0xe5a   :  { %v1278_v3 = vsel %vm1276_vm14, %v2564_v2, %v1152_v32 }
 0xe5b   :  { %1283 = vrot.lane.b32.xlu1 %v1278_v3, %s2136_s19 }
 0xe68   :  { %v651_v5 = vpop.permute.xlu0 %650 }
 0xe69   :  { %v674_v6 = vmul.f32 %v2419_v26, %v651_v5 }
 0xe6b   :  { %v682_v7 = vadd.f32 %v2432_v40, %v674_v6 }
 0xe6d   :  { %v697_v8 = vadd.f32 %v2425_v34, %v682_v7 }
 0xecd   :  { %v1284_v4 = vpop.permute.xlu1 %1283 }
 0xece   :  { %1938 = vmatmul.mubr.msk.f32.vlgmr.msra.gmra.mrb[10].mxu1 %vm714_vm6, %v1284_v4 }
 0xecf   :  { %2038 = vmatpush3.bf16.msra.mxu1 %v2304_v25  ;;  %1959 = vmatprep.mubr.msk.f32.mxu1 %vm2132_vm2, %v2133_v29 }
 0xed0   :  { %2039 = vmatprep.subr.bf16.mxu1 %v2131_v22  ;;  %v1383_v22 = vsel %vm1382_vm15, 1, %v2134_v30 }
 0xed3   :  { %2041 = vmatpush3.bf16.msra.mxu1 %v2314_v28 }
 0xfa1   :  { %v1353_v9 = vpop.f32.mrb[10].mxu1 }
 0xfa2   :  { %v1357_v10 = vadd.f32 %v1353_v9, %v697_v8  ;;  %v1939_v11 = vpop.f32.mrb[11].mxu1 }
 0xfa4   :  { %2107 = vtanh.f32 %v1357_v10  ;;  %v1691_v28 = vmul.f32 -1.442695, %v1357_v10 }
 0xfa6   :  { %2109 = vpow2.f32 %v1691_v28 }
 0xfae   :  { %v2108_v25 = vpop.eup %2107 }
 0xfaf   :  { %1367 = vrot.lane.b32.xlu1 %v2108_v25, %s2135_s0 }
 0xfb0   :  { %v2110_v29 = vpop.eup %2109 }
 0xfb1   :  { %v1361_v12 = vadd.f32 1.0, %v2110_v29  ;;  %v1605_v29 = vsel %vm1604_vm3, 1, %v2134_v30 }
 0xfb3   :  { %1385 = vperm.xlu1 %2066, %v1383_v22   ;;  %2111 = vrcp.f32 %v1361_v12 }
 0xfbd   :  { %v2112_v40 = vpop.eup %2111 }
 0xfbe   :  { %v1365_v15 = vmul.f32 %v2112_v40, %v1279_v14 }
0x1021   :  { %v1368_v36 = vpop.permute.xlu1 %1367 }
0x1022   :  { %v1370_v13 = vmul.f32 %v2112_v40, %v1368_v36 }
0x1024   :  { %1372 = vrot.lane.b32.xlu0 %v1370_v13, %s2136_s19 }
0x1032   :  { %v2590_v21 = vpop.permute.xlu1 %1385 }
0x1033   :  { %vm1387_vm0 = vcmp.eq.s32.totalorder %v2590_v21, 1  ;;  %v1040_v21 = vsel %vm1039_vm10, %v2507_v61, 0.0 }
0x1096   :  { %v1373_v16 = vpop.permute.xlu0 %1372 }
0x1097   :  { %v1375_v17 = vadd.f32 %v1373_v16, %v1365_v15 }
0x1099   :  { %2113 = vtanh.f32 %v1375_v17  ;;  %v1390_v55 = vsel %vm1387_vm0, %v1375_v17, %v1279_v14 }
0x10a3   :  { %v2114_v18 = vpop.eup %2113 }
0x10a4   :  { %1378 = vrot.lane.b32.xlu0 %v2114_v18, %s2135_s0 }
0x10a8   :  { %655 = vperm.xlu0 %2065, %v620_v19   ;;  %v1277_v19 = vsel %vm1276_vm14, %v2564_v2, 0.0 }
0x1116   :  { %v1379_v27 = vpop.permute.xlu0 %1378 }
0x1117   :  { %v1381_v32 = vmul.f32 %v2112_v40, %v1379_v27 }
0x1119   :  { %v1389_v33 = vsel %vm1387_vm0, %v1381_v32, %v1278_v3 }
0x111a   :  { %1394 = vrot.lane.b32.xlu1 %v1389_v33, %s2136_s19 }
0x1127   :  { %v656_v37 = vpop.permute.xlu0 %655 }
0x1128   :  { %v675_v39 = vmul.f32 %v2419_v26, %v656_v37 }
0x112a   :  { %v683_v44 = vadd.f32 %v675_v39, %v2438_v43 }
0x112c   :  { %v698_v45 = vadd.f32 %v2425_v34, %v683_v44 }
0x118c   :  { %v1395_v35 = vpop.permute.xlu1 %1394 }
0x118d   :  { %1949 = vmatmul.mubr.msk.f32.vlgmr.msra.gmra.mrb[16].mxu0 %vm714_vm6, %v1395_v35 }
0x1260   :  { %v1464_v46 = vpop.f32.mrb[16].mxu0 }
0x1261   :  { %v1468_v47 = vadd.f32 %v1464_v46, %v698_v45  ;;  %v1950_v49 = vpop.f32.mrb[17].mxu0 }
0x1262   :  { %v1151_v49 = vsel %vm1150_vm12, %v2536_v31, 0.0 }
0x1263   :  { %2115 = vtanh.f32 %v1468_v47  ;;  %v1693_v51 = vmul.f32 -1.442695, %v1468_v47 }
0x1265   :  { %2117 = vpow2.f32 %v1693_v51 }
0x126d   :  { %v2116_v50 = vpop.eup %2115 }
0x126e   :  { %1478 = vrot.lane.b32.xlu1 %v2116_v50, %s2135_s0 }
0x126f   :  { %v2118_v52 = vpop.eup %2117 }
0x1270   :  { %v1472_v41 = vadd.f32 1.0, %v2118_v52 }
0x1272   :  { %1496 = vperm.xlu1 %2066, %v1494_v38   ;;  %2119 = vrcp.f32 %v1472_v41 }
0x127c   :  { %v2120_v43 = vpop.eup %2119 }
0x127d   :  { %v1476_v56 = vmul.f32 %v2120_v43, %v1390_v55 }
0x12e0   :  { %v1479_v53 = vpop.permute.xlu1 %1478 }
0x12e1   :  { %v1481_v54 = vmul.f32 %v2120_v43, %v1479_v53 }
0x12e3   :  { %1483 = vrot.lane.b32.xlu0 %v1481_v54, %s2136_s19 }
0x12f1   :  { %v1497_v1 = vpop.permute.xlu1 %1496 }
0x12f2   :  { %vm1498_vm2 = vcmp.eq.s32.totalorder %v1497_v1, 1 }
0x1355   :  { %v1484_v57 = vpop.permute.xlu0 %1483 }
0x1356   :  { %v1486_v58 = vadd.f32 %v1484_v57, %v1476_v56 }
0x1358   :  { %2121 = vtanh.f32 %v1486_v58 }
0x1362   :  { %v2122_v60 = vpop.eup %2121 }
0x1363   :  { %1489 = vrot.lane.b32.xlu0 %v2122_v60, %s2135_s0 }
0x1367   :  { %660 = vperm.xlu0 %2065, %v621_v63  }
0x13d5   :  { %v1490_v3 = vpop.permute.xlu0 %1489 }
0x13d6   :  { %v1492_v4 = vmul.f32 %v2120_v43, %v1490_v3 }
0x13d8   :  { %v1500_v5 = vsel %vm1498_vm2, %v1492_v4, %v1389_v33 }
0x13d9   :  { %1505 = vrot.lane.b32.xlu1 %v1500_v5, %s2136_s19 }
0x13e6   :  { %v661_v7 = vpop.permute.xlu0 %660 }
0x13e7   :  { %v676_v8 = vmul.f32 %v2419_v26, %v661_v7  ;;  %v929_v26 = vsel %vm928_vm8, %v2478_v23, 0.0  ;;  %v1501_v23 = vsel %vm1498_vm2, %v1486_v58, %v1390_v55 }
0x13e9   :  { %v684_v9 = vadd.f32 %v2436_v42, %v676_v8  ;;  %v1499_v42 = vsel %vm1498_vm2, %v1492_v4, 0.0 }
0x13eb   :  { %v699_v10 = vadd.f32 %v2425_v34, %v684_v9  ;;  %v1388_v34 = vsel %vm1387_vm0, %v1381_v32, 0.0 }
0x144b   :  { %v1506_v6 = vpop.permute.xlu1 %1505 }
0x144c   :  { %1960 = vmatmul.mubr.msk.f32.vlgmr.msra.gmra.mrb[12].mxu1 %vm714_vm6, %v1506_v6 }
0x151f   :  { %v1575_v11 = vpop.f32.mrb[12].mxu1 }
0x1520   :  { %v1579_v25 = vadd.f32 %v1575_v11, %v699_v10  ;;  %v1961_v22 = vpop.f32.mrb[13].mxu1 }
0x1522   :  { %2123 = vtanh.f32 %v1579_v25  ;;  %v1695_v48 = vmul.f32 -1.442695, %v1579_v25 }
0x1524   :  { %2125 = vpow2.f32 %v1695_v48 }
0x152c   :  { %v2124_v28 = vpop.eup %2123 }
0x152d   :  { %1589 = vrot.lane.b32.xlu1 %v2124_v28, %s2135_s0 }
0x152e   :  { %v2126_v12 = vpop.eup %2125 }
0x152f   :  { %v1583_v30 = vadd.f32 1.0, %v2126_v12 }
0x1531   :  { %1607 = vperm.xlu1 %2066, %v1605_v29   ;;  %2127 = vrcp.f32 %v1583_v30 }
0x1535   :  { %1156 = vrot.lane.b32.xlu1 %v929_v26, %s2135_s0 }
0x1539   :  { %1618 = vrot.lane.b32.xlu1 %v1388_v34, %s2135_s0 }
0x153b   :  { %v2128_v40 = vpop.eup %2127 }
0x153c   :  { %v1587_v14 = vmul.f32 %v2128_v40, %v1501_v23 }
0x153d   :  { %1622 = vrot.lane.b32.xlu1 %v1499_v42, %s2137_s3 }
0x159f   :  { %v1590_v36 = vpop.permute.xlu1 %1589 }
0x15a0   :  { %v1592_v20 = vmul.f32 %v2128_v40, %v1590_v36 }
0x15a2   :  { %1594 = vrot.lane.b32.xlu0 %v1592_v20, %s2136_s19 }
0x15b0   :  { %v1608_v13 = vpop.permute.xlu1 %1607 }
0x15b1   :  { %vm1609_vm4 = vcmp.eq.s32.totalorder %v1608_v13, 1 }
0x15b4   :  { %v1157_v27 = vpop.permute.xlu1 %1156 }
0x15b5   :  { %v1163_v46 = vsel %vm714_vm6, %v2455_v62, %v1157_v27 }
0x15b8   :  { %v1619_v32 = vpop.permute.xlu1 %1618 }
0x15bc   :  { %v1623_v33 = vpop.permute.xlu1 %1622 }
0x1614   :  { %v1595_v15 = vpop.permute.xlu0 %1594 }
0x1615   :  { %v1597_v16 = vadd.f32 %v1595_v15, %v1587_v14 }
0x1617   :  { %2129 = vtanh.f32 %v1597_v16  ;;  %v1612_v17 = vsel %vm1609_vm4, %v1597_v16, %v1501_v23 }
0x1618   :  { %1636 = vrot.lane.b32.xlu1 %v1612_v17, %s2137_s3 }
0x1621   :  { %v2130_v18 = vpop.eup %2129 }
0x1622   :  { %1600 = vrot.lane.b32.xlu0 %v2130_v18, %s2135_s0 }
0x1626   :  { %1614 = vrot.lane.b32.xlu0 %v1277_v19, %s2136_s19 }
0x162a   :  { %1160 = vrot.lane.b32.xlu0 %v1040_v21, %s2137_s3 }
0x168a   :  { %v1637_v35 = vpop.permute.xlu1 %1636 }
0x168b   :  { %1639 = vst.msk [vmem:[%s2674_s15] sm:$0xff] %vm714_vm6, %v1637_v35 }
0x1694   :  { %v1601_v37 = vpop.permute.xlu0 %1600 }
0x1695   :  { %v1603_v39 = vmul.f32 %v2128_v40, %v1601_v37 }
0x1697   :  { %v1611_v0 = vsel %vm1609_vm4, %v1603_v39, %v1500_v5  ;;  %v1610_v2 = vsel %vm1609_vm4, %v1603_v39, 0.0 }
0x1698   :  { %1631 = vrot.lane.b32.xlu0 %v1611_v0, %s2136_s19  ;;  %v1615_v59 = vpop.permute.xlu0 %1614 }
0x1699   :  { %v1625_v61 = vsel %vm714_vm6, %v1615_v59, %v1619_v32 }
0x169a   :  { %v1626_v44 = vsel %vm1164_vm5, %v1625_v61, %v1623_v33 }
0x169b   :  { %v1627_v45 = vsel %vm1166_vm7, %v1626_v44, %v1610_v2 }
0x169c   :  { %1696 = vst [vmem:[%s2675_s13 + $0x8] sm:$0xff] %v1627_v45  ;;  %v1161_v47 = vpop.permute.xlu0 %1160 }
0x169d   :  { %v1165_v50 = vsel %vm1164_vm5, %v1163_v46, %v1161_v47 }
0x169e   :  { %v1167_v38 = vsel %vm1166_vm7, %v1165_v50, %v1151_v49 }
0x169f   :  { %1168 = vst [vmem:[%s2675_s13] sm:$0xff] %v1167_v38 }
0x170a   :  { %v1632_v51 = vpop.permute.xlu0 %1631 }
0x170b   :  { %1634 = vst.msk [vmem:[%s2676_s14] sm:$0xff] %vm714_vm6, %v1632_v51 }

</bundles_post_ra>
